<compile_context>
chip_gen: v7x
topology: tpu7x:2x2x1
jax: 0.10.0
libtpu: 0.0.40
codegen_flags: <defaults>
</compile_context>

<pallas_src>
import math

import jax
import jax.numpy as jnp
from jax import lax
from jax.experimental import pallas as pl
from jax.experimental.pallas import tpu as pltpu


# ----------------------------- in-kernel helpers -----------------------------

def _erf(x):
    # Abramowitz & Stegun 7.1.26 rational approximation (max abs error ~1.5e-7).
    # Uses only exp / mul / add / where, which all lower cleanly on Mosaic.
    a1, a2, a3, a4, a5 = 0.254829592, -0.284496736, 1.421413741, -1.453152027, 1.061405429
    p = 0.3275911
    ax = jnp.abs(x)
    t = 1.0 / (1.0 + p * ax)
    poly = ((((a5 * t + a4) * t + a3) * t + a2) * t + a1) * t
    y = 1.0 - poly * jnp.exp(-ax * ax)
    return jnp.where(x >= 0.0, y, -y)


def _gelu(x):
    # torch.nn.GELU() default: exact (erf) formulation.
    return 0.5 * x * (1.0 + _erf(x * jnp.float32(0.7071067811865476)))


def _layernorm(x, gamma, beta, eps=1e-5):
    mu = jnp.mean(x, axis=-1, keepdims=True)
    var = jnp.mean((x - mu) ** 2, axis=-1, keepdims=True)
    return (x - mu) * jax.lax.rsqrt(var + eps) * gamma + beta


# ----------------------------- fused transformer kernel ----------------------

def transformer_layer_kernel(x_ref, keep_ref,
                             wqkv_ref, wo_ref, w1_ref, w2_ref, small_ref,
                             hw1_ref, hw2_ref, hsmall_ref,
                             o_ref, x_sc):
    """Grid = (batch, layer).  One encoder block per step; head at the last layer."""
    l = pl.program_id(1)
    num_layers = pl.num_programs(1)

    D = x_sc.shape[1]
    H = w1_ref.shape[2]
    V = o_ref.shape[2]
    inv_sqrt_d = jnp.float32(1.0 / math.sqrt(D))

    # ---- load / initialize the resident activation slab for this sequence -------
    @pl.when(l == 0)
    def _():
        x_sc[...] = x_ref[0]                       # (S, D) f32

    x = x_sc[...]                                  # (S, D) f32

    # ---- unpack the lane-aligned per-layer small params --------------------------
    p = small_ref[0]                               # (8, ROW) f32
    bqkv  = p[0:1, :3 * D]
    bo    = p[1:2, :D]
    ln1_g = p[2:3, :D]
    ln1_b = p[3:4, :D]
    b1    = p[4:5, :H]
    b2    = p[5:6, :D]
    ln2_g = p[6:7, :D]
    ln2_b = p[7:8, :D]

    # ---- key-padding mask rebuilt in-kernel from the (1, S) keep vector ----------
    keep = keep_ref[0]                             # (1, S) f32
    mask_bias = jnp.where(keep > 0.5, 0.0, -1e9).astype(jnp.float32)

    # ---- self-attention (single head), fused QKV projection ----------------------
    xb = x.astype(jnp.bfloat16)
    qkv = jnp.dot(xb, wqkv_ref[0], preferred_element_type=jnp.float32) + bqkv
    q = (qkv[:, :D] * inv_sqrt_d).astype(jnp.bfloat16)        # 1/sqrt(d) folded into q
    k = qkv[:, D:2 * D].astype(jnp.bfloat16)
    v = qkv[:, 2 * D:3 * D].astype(jnp.bfloat16)

    # contract D of q with D of k directly (no explicit transpose of k)
    scores = lax.dot_general(q, k, (((1,), (1,)), ((), ())),
                             preferred_element_type=jnp.float32)   # (S, S)
    scores = scores + mask_bias                                     # broadcast over queries

    m = jnp.max(scores, axis=-1, keepdims=True)
    e = jnp.exp(scores - m)
    denom = jnp.sum(e, axis=-1, keepdims=True)
    p_attn = (e / denom).astype(jnp.bfloat16)                       # exact division

    attn = jnp.dot(p_attn, v, preferred_element_type=jnp.float32)
    attn = jnp.dot(attn.astype(jnp.bfloat16), wo_ref[0],
                   preferred_element_type=jnp.float32) + bo

    # residual + LayerNorm (f32)
    x = _layernorm(x + attn, ln1_g, ln1_b)

    # ---- feed-forward: D -> H -> D with exact GELU -------------------------------
    h = jnp.dot(x.astype(jnp.bfloat16), w1_ref[0],
                preferred_element_type=jnp.float32) + b1
    h = _gelu(h)
    h = jnp.dot(h.astype(jnp.bfloat16), w2_ref[0],
                preferred_element_type=jnp.float32) + b2

    # residual + LayerNorm (f32), carry to the next layer step
    x = _layernorm(x + h, ln2_g, ln2_b)
    x_sc[...] = x

    # ---- final head at the last layer: Linear -> GELU -> Linear(vocab) -----------
    @pl.when(l == num_layers - 1)
    def _():
        hp = hsmall_ref[...]                       # (8, HROW) f32
        hb1 = hp[0:1, :H]
        hb2 = hp[1:2, :V]
        hh = jnp.dot(x.astype(jnp.bfloat16), hw1_ref[...],
                     preferred_element_type=jnp.float32) + hb1
        hh = _gelu(hh)
        o_ref[0] = jnp.dot(hh.astype(jnp.bfloat16), hw2_ref[...],
                           preferred_element_type=jnp.float32) + hb2


def run_fused_transformer(x, keep, params):
    """x: (B, S, D) f32, keep: (B, 1, S) f32.  Returns (B, S, V) f32 logits."""
    B, S, D = x.shape
    L, _, threeD = params["wqkv"].shape
    H = params["w1"].shape[2]
    V = params["hw2"].shape[1]
    ROW = params["small"].shape[2]
    HROW = params["hsmall"].shape[1]

    batch_map = lambda b, l: (b, 0, 0)
    layer_map = lambda b, l: (l, 0, 0)
    const_map = lambda b, l: (0, 0)

    in_specs = [
        pl.BlockSpec((1, S, D), batch_map),              # x (per sequence)
        pl.BlockSpec((1, 1, S), batch_map),              # keep vector (per sequence)
        pl.BlockSpec((1, D, threeD), layer_map),         # wqkv (per layer, double-buffered)
        pl.BlockSpec((1, D, D), layer_map),              # wo
        pl.BlockSpec((1, D, H), layer_map),              # w1
        pl.BlockSpec((1, H, D), layer_map),              # w2
        pl.BlockSpec((1, 8, ROW), layer_map),            # packed small per-layer params
        pl.BlockSpec((D, H), const_map),                 # head w1 (resident)
        pl.BlockSpec((H, V), const_map),                 # head w2 (resident)
        pl.BlockSpec((8, HROW), const_map),              # packed head biases (resident)
    ]
    out_specs = pl.BlockSpec((1, S, V), batch_map)       # lane-dense (V multiple of 128)

    # --- VMEM budget: 2 layers of weights (double-buffer) + resident head/IO/scratch ---
    def nbytes(shape, dtype):
        n = 1
        for s in shape:
            n *= int(s)
        return n * jnp.dtype(dtype).itemsize

    per_layer = (nbytes((D, threeD), jnp.bfloat16) + nbytes((D, D), jnp.bfloat16)
                 + nbytes((D, H), jnp.bfloat16) + nbytes((H, D), jnp.bfloat16)
                 + nbytes((8, ROW), jnp.float32))
    resident = (nbytes((D, H), jnp.bfloat16) + nbytes((H, V), jnp.bfloat16)
                + nbytes((8, HROW), jnp.float32)
                + nbytes((S, D), jnp.float32)                      # activation scratch
                + 2 * (nbytes((S, D), jnp.float32) + nbytes((1, S), jnp.float32)
                       + nbytes((S, V), jnp.float32)))             # double-buffered x/keep/out
    vmem_limit = int(max(4 << 20, 2 * per_layer + resident + (2 << 20)))

    return pl.pallas_call(
        transformer_layer_kernel,
        out_shape=jax.ShapeDtypeStruct((B, S, V), jnp.float32),
        grid_spec=pltpu.PrefetchScalarGridSpec(
            num_scalar_prefetch=0,
            grid=(B, L),                                   # batch outer, layer inner
            in_specs=in_specs,
            out_specs=out_specs,
            scratch_shapes=[pltpu.VMEM((S, D), jnp.float32)],
        ),
        compiler_params=pltpu.CompilerParams(
            dimension_semantics=("parallel", "arbitrary"),
            vmem_limit_bytes=vmem_limit,
        ),
    )(x, keep, params["wqkv"], params["wo"], params["w1"], params["w2"],
      params["small"], params["hw1"], params["hw2"], params["hsmall"])


# ----------------------------- glue (JAX) -------------------------------------

def sinusoidal_pe_1d(seq_len, dim):
    """Interleaved sin/cos 1D positional encoding (PositionalEncoding1D semantics)."""
    channels = int(math.ceil(dim / 2) * 2)
    inv_freq = 1.0 / (10000.0 ** (jnp.arange(0, channels, 2, dtype=jnp.float32) / channels))
    pos = jnp.arange(seq_len, dtype=jnp.float32)
    sin_inp = pos[:, None] * inv_freq[None, :]                         # (S, channels//2)
    emb = jnp.stack([jnp.sin(sin_inp), jnp.cos(sin_inp)], axis=-1)     # (S, ch//2, 2)
    emb = emb.reshape(seq_len, channels)[:, :dim]
    return emb                                                          # (S, D)


def transformer_forward(params, input_ids, attention_mask, return_last=False):
    # embedding (gather) + positional encoding (Summer adds PE) — plain-JAX glue
    x = jnp.take(params["embedding"], input_ids, axis=0)              # (B, S, D)
    B, S, D = x.shape
    x = x + sinusoidal_pe_1d(S, D)[None, :, :]

    keep = attention_mask.astype(jnp.float32).reshape(B, 1, S)        # key-padding keep vector

    logits = run_fused_transformer(x.astype(jnp.float32), keep, params)  # (B, S, V)

    if return_last:
        # the head is position-wise, so head(X)[:, -1] == head(X[:, -1])
        return logits[:, -1, :]                                        # (B, V)
    return logits                                                      # (B, S, V)


# ----------------------------- parameter init ---------------------------------

def init_params(key, num_layers, dim, scale_factor, vocab_size):
    hidden = dim * scale_factor
    row = ((max(3 * dim, hidden, 128) + 127) // 128) * 128    # lane-aligned packed row width
    hrow = ((max(hidden, vocab_size, 128) + 127) // 128) * 128

    keys = iter(jax.random.split(key, 3 + 4 * num_layers))

    def dense(k, fan_in, fan_out):
        lim = 1.0 / math.sqrt(fan_in)
        w = jax.random.uniform(k, (fan_in, fan_out), jnp.float32, -lim, lim)
        return w.astype(jnp.bfloat16)                          # matmul weights in bf16

    embedding = jax.random.normal(next(keys), (vocab_size, dim), jnp.float32) * 0.02

    wqkv, wo, w1, w2 = [], [], [], []
    for _ in range(num_layers):
        wqkv.append(dense(next(keys), dim, 3 * dim))
        wo.append(dense(next(keys), dim, dim))
        w1.append(dense(next(keys), dim, hidden))
        w2.append(dense(next(keys), hidden, dim))

    # packed small per-layer params (f32):
    # row 0: bqkv(3D) | 1: bo(D) | 2: ln1_g(D) | 3: ln1_b(D) | 4: b1(H) | 5: b2(D)
    # row 6: ln2_g(D) | 7: ln2_b(D)
    small = jnp.zeros((num_layers, 8, row), jnp.float32)
    small = small.at[:, 2, :dim].set(1.0)    # ln1 gamma
    small = small.at[:, 6, :dim].set(1.0)    # ln2 gamma

    # packed head biases (f32): row 0 = hb1(H), row 1 = hb2(V)
    hsmall = jnp.zeros((8, hrow), jnp.float32)

    return {
        "embedding": embedding,
        "wqkv": jnp.stack(wqkv),             # (L, D, 3D)  bf16
        "wo":   jnp.stack(wo),               # (L, D, D)   bf16
        "w1":   jnp.stack(w1),               # (L, D, H)   bf16
        "w2":   jnp.stack(w2),               # (L, H, D)   bf16
        "small": small,                      # (L, 8, ROW) f32
        "hw1": dense(next(keys), dim, hidden),            # (D, H) bf16
        "hw2": dense(next(keys), hidden, vocab_size),     # (H, V) bf16
        "hsmall": hsmall,                    # (8, HROW) f32
    }


# ----------------------------- main --------------------------------------------

if __name__ == "__main__":
    NUM_LAYERS = 2
    DIM = 128            # lane-aligned model dim (multiple of 128 per review)
    SCALE_FACTOR = 4
    VOCAB = 128          # synthetic stand-in for bert-base-cased vocab (28996)
    B, S = 2, 8

    key = jax.random.PRNGKey(0)
    k_param, k_ids = jax.random.split(key)

    params = init_params(k_param, NUM_LAYERS, DIM, SCALE_FACTOR, VOCAB)

    input_ids = jax.random.randint(k_ids, (B, S), 0, VOCAB, dtype=jnp.int32)
    attention_mask = jnp.ones((B, S), dtype=jnp.int32).at[1, S - 2:].set(0)  # pad tail of seq 1

    fwd = jax.jit(transformer_forward, static_argnames=("return_last",))

    out = jax.block_until_ready(fwd(params, input_ids, attention_mask, return_last=False))
    assert out.shape == (B, S, VOCAB) and out.dtype == jnp.float32
    assert bool(jnp.all(jnp.isfinite(out)))

    out_last = jax.block_until_ready(fwd(params, input_ids, attention_mask, return_last=True))
    assert out_last.shape == (B, VOCAB)
    assert bool(jnp.all(jnp.isfinite(out_last)))

    print("KERNEL_OK")
</pallas_src>

<mosaic_0001>
module attributes {stable_mosaic.version = 11 : i64} {
  func.func @transformer_layer_kernel(%arg0: i32, %arg1: i32, %arg2: memref<1x8x128xf32, #tpu.memory_space<vmem>>, %arg3: memref<1x1x8xf32, #tpu.memory_space<vmem>>, %arg4: memref<1x128x384xbf16, #tpu.memory_space<vmem>>, %arg5: memref<1x128x128xbf16, #tpu.memory_space<vmem>>, %arg6: memref<1x128x512xbf16, #tpu.memory_space<vmem>>, %arg7: memref<1x512x128xbf16, #tpu.memory_space<vmem>>, %arg8: memref<1x8x512xf32, #tpu.memory_space<vmem>>, %arg9: memref<128x512xbf16, #tpu.memory_space<vmem>>, %arg10: memref<512x128xbf16, #tpu.memory_space<vmem>>, %arg11: memref<8x512xf32, #tpu.memory_space<vmem>>, %arg12: memref<1x8x128xf32, #tpu.memory_space<vmem>>, %arg13: memref<8x128xf32, #tpu.memory_space<vmem>>) attributes {dimension_semantics = [#tpu.dimension_semantics<parallel>, #tpu.dimension_semantics<arbitrary>], iteration_bounds = array<i64: 2, 2>, scalar_prefetch = 0 : i64, scratch_operands = 1 : i64, tpu.core_type = #tpu.core_type<tc>, window_params = [{transform_indices = @transform_0, window_bounds = array<i64: 1, 8, 128>}, {transform_indices = @transform_1, window_bounds = array<i64: 1, 1, 8>}, {transform_indices = @transform_2, window_bounds = array<i64: 1, 128, 384>}, {transform_indices = @transform_3, window_bounds = array<i64: 1, 128, 128>}, {transform_indices = @transform_4, window_bounds = array<i64: 1, 128, 512>}, {transform_indices = @transform_5, window_bounds = array<i64: 1, 512, 128>}, {transform_indices = @transform_6, window_bounds = array<i64: 1, 8, 512>}, {pipeline_mode = #tpu.pipeline_mode<synchronous>, transform_indices = @transform_7, window_bounds = array<i64: 128, 512>}, {pipeline_mode = #tpu.pipeline_mode<synchronous>, transform_indices = @transform_8, window_bounds = array<i64: 512, 128>}, {pipeline_mode = #tpu.pipeline_mode<synchronous>, transform_indices = @transform_9, window_bounds = array<i64: 8, 512>}, {transform_indices = @transform_10, window_bounds = array<i64: 1, 8, 128>}]} {
    %c0_i32 = arith.constant 0 : i32
    %0 = arith.cmpi eq, %arg1, %c0_i32 : i32
    %1 = arith.extui %0 : i1 to i32
    %c0_i32_0 = arith.constant 0 : i32
    %2 = arith.cmpi ne, %1, %c0_i32_0 : i32
    scf.if %2 {
      %c0_59 = arith.constant 0 : index
      %c0_60 = arith.constant 0 : index
      %c0_61 = arith.constant 0 : index
      %157 = vector.load %arg2[%c0_59, %c0_60, %c0_61] : memref<1x8x128xf32, #tpu.memory_space<vmem>>, vector<1x8x128xf32>
      %158 = vector.shape_cast %157 : vector<1x8x128xf32> to vector<8x128xf32>
      %c0_62 = arith.constant 0 : index
      %c0_63 = arith.constant 0 : index
      %159 = vector.load %arg13[%c0_62, %c0_63] : memref<8x128xf32, #tpu.memory_space<vmem>>, vector<8x128xf32>
      tpu.vector_store %arg13[%c0_62, %c0_63], %158 {strides = array<i32>} : memref<8x128xf32, #tpu.memory_space<vmem>>, vector<8x128xf32>,
    } else {
    }
    %c0 = arith.constant 0 : index
    %c0_1 = arith.constant 0 : index
    %3 = vector.load %arg13[%c0, %c0_1] : memref<8x128xf32, #tpu.memory_space<vmem>>, vector<8x128xf32>
    %c0_2 = arith.constant 0 : index
    %c0_3 = arith.constant 0 : index
    %c0_4 = arith.constant 0 : index
    %4 = vector.load %arg8[%c0_2, %c0_3, %c0_4] : memref<1x8x512xf32, #tpu.memory_space<vmem>>, vector<1x8x512xf32>
    %5 = vector.shape_cast %4 : vector<1x8x512xf32> to vector<8x512xf32>
    %6 = vector.extract_strided_slice %5 {offsets = [0, 0], sizes = [1, 384], strides = [1, 1]} : vector<8x512xf32> to vector<1x384xf32>
    %7 = vector.extract_strided_slice %5 {offsets = [1, 0], sizes = [1, 128], strides = [1, 1]} : vector<8x512xf32> to vector<1x128xf32>
    %8 = vector.extract_strided_slice %5 {offsets = [2, 0], sizes = [1, 128], strides = [1, 1]} : vector<8x512xf32> to vector<1x128xf32>
    %9 = vector.extract_strided_slice %5 {offsets = [3, 0], sizes = [1, 128], strides = [1, 1]} : vector<8x512xf32> to vector<1x128xf32>
    %10 = vector.extract_strided_slice %5 {offsets = [4, 0], sizes = [1, 512], strides = [1, 1]} : vector<8x512xf32> to vector<1x512xf32>
    %11 = vector.extract_strided_slice %5 {offsets = [5, 0], sizes = [1, 128], strides = [1, 1]} : vector<8x512xf32> to vector<1x128xf32>
    %12 = vector.extract_strided_slice %5 {offsets = [6, 0], sizes = [1, 128], strides = [1, 1]} : vector<8x512xf32> to vector<1x128xf32>
    %13 = vector.extract_strided_slice %5 {offsets = [7, 0], sizes = [1, 128], strides = [1, 1]} : vector<8x512xf32> to vector<1x128xf32>
    %c0_5 = arith.constant 0 : index
    %c0_6 = arith.constant 0 : index
    %c0_7 = arith.constant 0 : index
    %14 = vector.load %arg3[%c0_5, %c0_6, %c0_7] : memref<1x1x8xf32, #tpu.memory_space<vmem>>, vector<1x1x8xf32>
    %15 = vector.shape_cast %14 : vector<1x1x8xf32> to vector<1x8xf32>
    %cst = arith.constant 5.000000e-01 : f32
    %16 = vector.broadcast %cst : f32 to vector<1x8xf32>
    %17 = arith.cmpf ogt, %15, %16 : vector<1x8xf32>
    %cst_8 = arith.constant 0.000000e+00 : f32
    %cst_9 = arith.constant -1.000000e+09 : f32
    %18 = vector.broadcast %cst_8 : f32 to vector<1x8xf32>
    %19 = vector.broadcast %cst_9 : f32 to vector<1x8xf32>
    %20 = arith.select %17, %18, %19 : vector<1x8xi1>, vector<1x8xf32>
    %21 = arith.truncf %3 : vector<8x128xf32> to vector<8x128xbf16>
    %c0_10 = arith.constant 0 : index
    %c0_11 = arith.constant 0 : index
    %c0_12 = arith.constant 0 : index
    %22 = vector.load %arg4[%c0_10, %c0_11, %c0_12] : memref<1x128x384xbf16, #tpu.memory_space<vmem>>, vector<1x128x384xbf16>
    %23 = vector.shape_cast %22 : vector<1x128x384xbf16> to vector<128x384xbf16>
    %cst_13 = arith.constant dense<0.000000e+00> : vector<8x384xf32>
    %24 = tpu.matmul %21, %23, %cst_13 {dimension_numbers = #tpu.dot_dimension_numbers<[1], [0], [0], [1], [0, 0, 1, 1], [], []>} : vector<8x128xbf16>, vector<128x384xbf16>, vector<8x384xf32> -> vector<8x384xf32>
    %25 = vector.broadcast %6 : vector<1x384xf32> to vector<8x384xf32>
    %26 = arith.addf %24, %25 : vector<8x384xf32>
    %27 = vector.extract_strided_slice %26 {offsets = [0, 0], sizes = [8, 128], strides = [1, 1]} : vector<8x384xf32> to vector<8x128xf32>
    %cst_14 = arith.constant 0.0883883461 : f32
    %28 = vector.broadcast %cst_14 : f32 to vector<8x128xf32>
    %29 = arith.mulf %27, %28 : vector<8x128xf32>
    %30 = arith.truncf %29 : vector<8x128xf32> to vector<8x128xbf16>
    %31 = vector.extract_strided_slice %26 {offsets = [0, 128], sizes = [8, 128], strides = [1, 1]} : vector<8x384xf32> to vector<8x128xf32>
    %32 = arith.truncf %31 : vector<8x128xf32> to vector<8x128xbf16>
    %33 = vector.extract_strided_slice %26 {offsets = [0, 256], sizes = [8, 128], strides = [1, 1]} : vector<8x384xf32> to vector<8x128xf32>
    %34 = arith.truncf %33 : vector<8x128xf32> to vector<8x128xbf16>
    %cst_15 = arith.constant dense<0.000000e+00> : vector<8x8xf32>
    %35 = tpu.matmul %30, %32, %cst_15 {dimension_numbers = #tpu.dot_dimension_numbers<[1], [1], [0], [0], [0, 0, 1, 0], [], []>} : vector<8x128xbf16>, vector<8x128xbf16>, vector<8x8xf32> -> vector<8x8xf32>
    %36 = vector.broadcast %20 : vector<1x8xf32> to vector<8x8xf32>
    %37 = arith.addf %35, %36 : vector<8x8xf32>
    %cst_16 = arith.constant dense<0xFF800000> : vector<8xf32>
    %38 = vector.multi_reduction <maximumf>, %37, %cst_16 [1] : vector<8x8xf32> to vector<8xf32>
    %39 = vector.shape_cast %38 : vector<8xf32> to vector<8x1xf32>
    %40 = vector.broadcast %39 : vector<8x1xf32> to vector<8x8xf32>
    %41 = arith.subf %37, %40 : vector<8x8xf32>
    %42 = math.exp %41 : vector<8x8xf32>
    %cst_17 = arith.constant dense<0.000000e+00> : vector<8xf32>
    %43 = vector.multi_reduction <add>, %42, %cst_17 [1] : vector<8x8xf32> to vector<8xf32>
    %44 = vector.shape_cast %43 : vector<8xf32> to vector<8x1xf32>
    %45 = vector.broadcast %44 : vector<8x1xf32> to vector<8x8xf32>
    %46 = arith.divf %42, %45 : vector<8x8xf32>
    %47 = arith.truncf %46 : vector<8x8xf32> to vector<8x8xbf16>
    %cst_18 = arith.constant dense<0.000000e+00> : vector<8x128xf32>
    %48 = tpu.matmul %47, %34, %cst_18 {dimension_numbers = #tpu.dot_dimension_numbers<[1], [0], [0], [1], [0, 0, 1, 1], [], []>} : vector<8x8xbf16>, vector<8x128xbf16>, vector<8x128xf32> -> vector<8x128xf32>
    %49 = arith.truncf %48 : vector<8x128xf32> to vector<8x128xbf16>
    %c0_19 = arith.constant 0 : index
    %c0_20 = arith.constant 0 : index
    %c0_21 = arith.constant 0 : index
    %50 = vector.load %arg5[%c0_19, %c0_20, %c0_21] : memref<1x128x128xbf16, #tpu.memory_space<vmem>>, vector<1x128x128xbf16>
    %51 = vector.shape_cast %50 : vector<1x128x128xbf16> to vector<128x128xbf16>
    %cst_22 = arith.constant dense<0.000000e+00> : vector<8x128xf32>
    %52 = tpu.matmul %49, %51, %cst_22 {dimension_numbers = #tpu.dot_dimension_numbers<[1], [0], [0], [1], [0, 0, 1, 1], [], []>} : vector<8x128xbf16>, vector<128x128xbf16>, vector<8x128xf32> -> vector<8x128xf32>
    %53 = vector.broadcast %7 : vector<1x128xf32> to vector<8x128xf32>
    %54 = arith.addf %52, %53 : vector<8x128xf32>
    %55 = arith.addf %3, %54 : vector<8x128xf32>
    %cst_23 = arith.constant dense<0.000000e+00> : vector<8xf32>
    %56 = vector.multi_reduction <add>, %55, %cst_23 [1] : vector<8x128xf32> to vector<8xf32>
    %57 = vector.shape_cast %56 : vector<8xf32> to vector<8x1xf32>
    %cst_24 = arith.constant 1.280000e+02 : f32
    %58 = vector.broadcast %cst_24 : f32 to vector<8x1xf32>
    %59 = arith.divf %57, %58 : vector<8x1xf32>
    %60 = vector.broadcast %59 : vector<8x1xf32> to vector<8x128xf32>
    %61 = arith.subf %55, %60 : vector<8x128xf32>
    %62 = arith.mulf %61, %61 : vector<8x128xf32>
    %cst_25 = arith.constant dense<0.000000e+00> : vector<8xf32>
    %63 = vector.multi_reduction <add>, %62, %cst_25 [1] : vector<8x128xf32> to vector<8xf32>
    %64 = vector.shape_cast %63 : vector<8xf32> to vector<8x1xf32>
    %cst_26 = arith.constant 1.280000e+02 : f32
    %65 = vector.broadcast %cst_26 : f32 to vector<8x1xf32>
    %66 = arith.divf %64, %65 : vector<8x1xf32>
    %67 = vector.broadcast %59 : vector<8x1xf32> to vector<8x128xf32>
    %68 = arith.subf %55, %67 : vector<8x128xf32>
    %cst_27 = arith.constant 9.99999974E-6 : f32
    %69 = vector.broadcast %cst_27 : f32 to vector<8x1xf32>
    %70 = arith.addf %66, %69 : vector<8x1xf32>
    %71 = math.rsqrt %70 : vector<8x1xf32>
    %72 = vector.broadcast %71 : vector<8x1xf32> to vector<8x128xf32>
    %73 = arith.mulf %68, %72 : vector<8x128xf32>
    %74 = vector.broadcast %8 : vector<1x128xf32> to vector<8x128xf32>
    %75 = arith.mulf %73, %74 : vector<8x128xf32>
    %76 = vector.broadcast %9 : vector<1x128xf32> to vector<8x128xf32>
    %77 = arith.addf %75, %76 : vector<8x128xf32>
    %78 = arith.truncf %77 : vector<8x128xf32> to vector<8x128xbf16>
    %c0_28 = arith.constant 0 : index
    %c0_29 = arith.constant 0 : index
    %c0_30 = arith.constant 0 : index
    %79 = vector.load %arg6[%c0_28, %c0_29, %c0_30] : memref<1x128x512xbf16, #tpu.memory_space<vmem>>, vector<1x128x512xbf16>
    %80 = vector.shape_cast %79 : vector<1x128x512xbf16> to vector<128x512xbf16>
    %cst_31 = arith.constant dense<0.000000e+00> : vector<8x512xf32>
    %81 = tpu.matmul %78, %80, %cst_31 {dimension_numbers = #tpu.dot_dimension_numbers<[1], [0], [0], [1], [0, 0, 1, 1], [], []>} : vector<8x128xbf16>, vector<128x512xbf16>, vector<8x512xf32> -> vector<8x512xf32>
    %82 = vector.broadcast %10 : vector<1x512xf32> to vector<8x512xf32>
    %83 = arith.addf %81, %82 : vector<8x512xf32>
    %cst_32 = arith.constant 5.000000e-01 : f32
    %84 = vector.broadcast %cst_32 : f32 to vector<8x512xf32>
    %85 = arith.mulf %84, %83 : vector<8x512xf32>
    %cst_33 = arith.constant 0.707106769 : f32
    %86 = vector.broadcast %cst_33 : f32 to vector<8x512xf32>
    %87 = arith.mulf %83, %86 : vector<8x512xf32>
    %88 = math.absf %87 : vector<8x512xf32>
    %cst_34 = arith.constant 0.327591091 : f32
    %89 = vector.broadcast %cst_34 : f32 to vector<8x512xf32>
    %90 = arith.mulf %89, %88 : vector<8x512xf32>
    %cst_35 = arith.constant 1.000000e+00 : f32
    %91 = vector.broadcast %cst_35 : f32 to vector<8x512xf32>
    %92 = arith.addf %91, %90 : vector<8x512xf32>
    %cst_36 = arith.constant 1.000000e+00 : f32
    %93 = vector.broadcast %cst_36 : f32 to vector<8x512xf32>
    %94 = arith.divf %93, %92 : vector<8x512xf32>
    %cst_37 = arith.constant 1.06140542 : f32
    %95 = vector.broadcast %cst_37 : f32 to vector<8x512xf32>
    %96 = arith.mulf %95, %94 : vector<8x512xf32>
    %cst_38 = arith.constant -1.45315206 : f32
    %97 = vector.broadcast %cst_38 : f32 to vector<8x512xf32>
    %98 = arith.addf %96, %97 : vector<8x512xf32>
    %99 = arith.mulf %98, %94 : vector<8x512xf32>
    %cst_39 = arith.constant 1.42141378 : f32
    %100 = vector.broadcast %cst_39 : f32 to vector<8x512xf32>
    %101 = arith.addf %99, %100 : vector<8x512xf32>
    %102 = arith.mulf %101, %94 : vector<8x512xf32>
    %cst_40 = arith.constant -0.284496725 : f32
    %103 = vector.broadcast %cst_40 : f32 to vector<8x512xf32>
    %104 = arith.addf %102, %103 : vector<8x512xf32>
    %105 = arith.mulf %104, %94 : vector<8x512xf32>
    %cst_41 = arith.constant 0.254829586 : f32
    %106 = vector.broadcast %cst_41 : f32 to vector<8x512xf32>
    %107 = arith.addf %105, %106 : vector<8x512xf32>
    %108 = arith.mulf %107, %94 : vector<8x512xf32>
    %cst_42 = arith.constant 0.000000e+00 : f32
    %109 = vector.broadcast %cst_42 : f32 to vector<8x512xf32>
    %110 = arith.subf %109, %88 : vector<8x512xf32>
    %111 = arith.mulf %110, %88 : vector<8x512xf32>
    %112 = math.exp %111 : vector<8x512xf32>
    %113 = arith.mulf %108, %112 : vector<8x512xf32>
    %cst_43 = arith.constant 1.000000e+00 : f32
    %114 = vector.broadcast %cst_43 : f32 to vector<8x512xf32>
    %115 = arith.subf %114, %113 : vector<8x512xf32>
    %cst_44 = arith.constant 0.000000e+00 : f32
    %116 = vector.broadcast %cst_44 : f32 to vector<8x512xf32>
    %117 = arith.cmpf oge, %87, %116 : vector<8x512xf32>
    %cst_45 = arith.constant 0.000000e+00 : f32
    %118 = vector.broadcast %cst_45 : f32 to vector<8x512xf32>
    %119 = arith.subf %118, %115 : vector<8x512xf32>
    %120 = arith.select %117, %115, %119 : vector<8x512xi1>, vector<8x512xf32>
    %cst_46 = arith.constant 1.000000e+00 : f32
    %121 = vector.broadcast %cst_46 : f32 to vector<8x512xf32>
    %122 = arith.addf %121, %120 : vector<8x512xf32>
    %123 = arith.mulf %85, %122 : vector<8x512xf32>
    %124 = arith.truncf %123 : vector<8x512xf32> to vector<8x512xbf16>
    %c0_47 = arith.constant 0 : index
    %c0_48 = arith.constant 0 : index
    %c0_49 = arith.constant 0 : index
    %125 = vector.load %arg7[%c0_47, %c0_48, %c0_49] : memref<1x512x128xbf16, #tpu.memory_space<vmem>>, vector<1x512x128xbf16>
    %126 = vector.shape_cast %125 : vector<1x512x128xbf16> to vector<512x128xbf16>
    %cst_50 = arith.constant dense<0.000000e+00> : vector<8x128xf32>
    %127 = tpu.matmul %124, %126, %cst_50 {dimension_numbers = #tpu.dot_dimension_numbers<[1], [0], [0], [1], [0, 0, 1, 1], [], []>} : vector<8x512xbf16>, vector<512x128xbf16>, vector<8x128xf32> -> vector<8x128xf32>
    %128 = vector.broadcast %11 : vector<1x128xf32> to vector<8x128xf32>
    %129 = arith.addf %127, %128 : vector<8x128xf32>
    %130 = arith.addf %77, %129 : vector<8x128xf32>
    %cst_51 = arith.constant dense<0.000000e+00> : vector<8xf32>
    %131 = vector.multi_reduction <add>, %130, %cst_51 [1] : vector<8x128xf32> to vector<8xf32>
    %132 = vector.shape_cast %131 : vector<8xf32> to vector<8x1xf32>
    %cst_52 = arith.constant 1.280000e+02 : f32
    %133 = vector.broadcast %cst_52 : f32 to vector<8x1xf32>
    %134 = arith.divf %132, %133 : vector<8x1xf32>
    %135 = vector.broadcast %134 : vector<8x1xf32> to vector<8x128xf32>
    %136 = arith.subf %130, %135 : vector<8x128xf32>
    %137 = arith.mulf %136, %136 : vector<8x128xf32>
    %cst_53 = arith.constant dense<0.000000e+00> : vector<8xf32>
    %138 = vector.multi_reduction <add>, %137, %cst_53 [1] : vector<8x128xf32> to vector<8xf32>
    %139 = vector.shape_cast %138 : vector<8xf32> to vector<8x1xf32>
    %cst_54 = arith.constant 1.280000e+02 : f32
    %140 = vector.broadcast %cst_54 : f32 to vector<8x1xf32>
    %141 = arith.divf %139, %140 : vector<8x1xf32>
    %142 = vector.broadcast %134 : vector<8x1xf32> to vector<8x128xf32>
    %143 = arith.subf %130, %142 : vector<8x128xf32>
    %cst_55 = arith.constant 9.99999974E-6 : f32
    %144 = vector.broadcast %cst_55 : f32 to vector<8x1xf32>
    %145 = arith.addf %141, %144 : vector<8x1xf32>
    %146 = math.rsqrt %145 : vector<8x1xf32>
    %147 = vector.broadcast %146 : vector<8x1xf32> to vector<8x128xf32>
    %148 = arith.mulf %143, %147 : vector<8x128xf32>
    %149 = vector.broadcast %12 : vector<1x128xf32> to vector<8x128xf32>
    %150 = arith.mulf %148, %149 : vector<8x128xf32>
    %151 = vector.broadcast %13 : vector<1x128xf32> to vector<8x128xf32>
    %152 = arith.addf %150, %151 : vector<8x128xf32>
    %c0_56 = arith.constant 0 : index
    %c0_57 = arith.constant 0 : index
    %153 = vector.load %arg13[%c0_56, %c0_57] : memref<8x128xf32, #tpu.memory_space<vmem>>, vector<8x128xf32>
    tpu.vector_store %arg13[%c0_56, %c0_57], %152 {strides = array<i32>} : memref<8x128xf32, #tpu.memory_space<vmem>>, vector<8x128xf32>,
    %c1_i32 = arith.constant 1 : i32
    %154 = arith.cmpi eq, %arg1, %c1_i32 : i32
    %155 = arith.extui %154 : i1 to i32
    %c0_i32_58 = arith.constant 0 : i32
    %156 = arith.cmpi ne, %155, %c0_i32_58 : i32
    scf.if %156 {
      %c0_59 = arith.constant 0 : index
      %c0_60 = arith.constant 0 : index
      %157 = vector.load %arg11[%c0_59, %c0_60] : memref<8x512xf32, #tpu.memory_space<vmem>>, vector<8x512xf32>
      %158 = vector.extract_strided_slice %157 {offsets = [0, 0], sizes = [1, 512], strides = [1, 1]} : vector<8x512xf32> to vector<1x512xf32>
      %159 = vector.extract_strided_slice %157 {offsets = [1, 0], sizes = [1, 128], strides = [1, 1]} : vector<8x512xf32> to vector<1x128xf32>
      %160 = arith.truncf %152 : vector<8x128xf32> to vector<8x128xbf16>
      %c0_61 = arith.constant 0 : index
      %c0_62 = arith.constant 0 : index
      %161 = vector.load %arg9[%c0_61, %c0_62] : memref<128x512xbf16, #tpu.memory_space<vmem>>, vector<128x512xbf16>
      %cst_63 = arith.constant dense<0.000000e+00> : vector<8x512xf32>
      %162 = tpu.matmul %160, %161, %cst_63 {dimension_numbers = #tpu.dot_dimension_numbers<[1], [0], [0], [1], [0, 0, 1, 1], [], []>} : vector<8x128xbf16>, vector<128x512xbf16>, vector<8x512xf32> -> vector<8x512xf32>
      %163 = vector.broadcast %158 : vector<1x512xf32> to vector<8x512xf32>
      %164 = arith.addf %162, %163 : vector<8x512xf32>
      %cst_64 = arith.constant 5.000000e-01 : f32
      %165 = vector.broadcast %cst_64 : f32 to vector<8x512xf32>
      %166 = arith.mulf %165, %164 : vector<8x512xf32>
      %cst_65 = arith.constant 0.707106769 : f32
      %167 = vector.broadcast %cst_65 : f32 to vector<8x512xf32>
      %168 = arith.mulf %164, %167 : vector<8x512xf32>
      %169 = math.absf %168 : vector<8x512xf32>
      %cst_66 = arith.constant 0.327591091 : f32
      %170 = vector.broadcast %cst_66 : f32 to vector<8x512xf32>
      %171 = arith.mulf %170, %169 : vector<8x512xf32>
      %cst_67 = arith.constant 1.000000e+00 : f32
      %172 = vector.broadcast %cst_67 : f32 to vector<8x512xf32>
      %173 = arith.addf %172, %171 : vector<8x512xf32>
      %cst_68 = arith.constant 1.000000e+00 : f32
      %174 = vector.broadcast %cst_68 : f32 to vector<8x512xf32>
      %175 = arith.divf %174, %173 : vector<8x512xf32>
      %cst_69 = arith.constant 1.06140542 : f32
      %176 = vector.broadcast %cst_69 : f32 to vector<8x512xf32>
      %177 = arith.mulf %176, %175 : vector<8x512xf32>
      %cst_70 = arith.constant -1.45315206 : f32
      %178 = vector.broadcast %cst_70 : f32 to vector<8x512xf32>
      %179 = arith.addf %177, %178 : vector<8x512xf32>
      %180 = arith.mulf %179, %175 : vector<8x512xf32>
      %cst_71 = arith.constant 1.42141378 : f32
      %181 = vector.broadcast %cst_71 : f32 to vector<8x512xf32>
      %182 = arith.addf %180, %181 : vector<8x512xf32>
      %183 = arith.mulf %182, %175 : vector<8x512xf32>
      %cst_72 = arith.constant -0.284496725 : f32
      %184 = vector.broadcast %cst_72 : f32 to vector<8x512xf32>
      %185 = arith.addf %183, %184 : vector<8x512xf32>
      %186 = arith.mulf %185, %175 : vector<8x512xf32>
      %cst_73 = arith.constant 0.254829586 : f32
      %187 = vector.broadcast %cst_73 : f32 to vector<8x512xf32>
      %188 = arith.addf %186, %187 : vector<8x512xf32>
      %189 = arith.mulf %188, %175 : vector<8x512xf32>
      %cst_74 = arith.constant 0.000000e+00 : f32
      %190 = vector.broadcast %cst_74 : f32 to vector<8x512xf32>
      %191 = arith.subf %190, %169 : vector<8x512xf32>
      %192 = arith.mulf %191, %169 : vector<8x512xf32>
      %193 = math.exp %192 : vector<8x512xf32>
      %194 = arith.mulf %189, %193 : vector<8x512xf32>
      %cst_75 = arith.constant 1.000000e+00 : f32
      %195 = vector.broadcast %cst_75 : f32 to vector<8x512xf32>
      %196 = arith.subf %195, %194 : vector<8x512xf32>
      %cst_76 = arith.constant 0.000000e+00 : f32
      %197 = vector.broadcast %cst_76 : f32 to vector<8x512xf32>
      %198 = arith.cmpf oge, %168, %197 : vector<8x512xf32>
      %cst_77 = arith.constant 0.000000e+00 : f32
      %199 = vector.broadcast %cst_77 : f32 to vector<8x512xf32>
      %200 = arith.subf %199, %196 : vector<8x512xf32>
      %201 = arith.select %198, %196, %200 : vector<8x512xi1>, vector<8x512xf32>
      %cst_78 = arith.constant 1.000000e+00 : f32
      %202 = vector.broadcast %cst_78 : f32 to vector<8x512xf32>
      %203 = arith.addf %202, %201 : vector<8x512xf32>
      %204 = arith.mulf %166, %203 : vector<8x512xf32>
      %205 = arith.truncf %204 : vector<8x512xf32> to vector<8x512xbf16>
      %c0_79 = arith.constant 0 : index
      %c0_80 = arith.constant 0 : index
      %206 = vector.load %arg10[%c0_79, %c0_80] : memref<512x128xbf16, #tpu.memory_space<vmem>>, vector<512x128xbf16>
      %cst_81 = arith.constant dense<0.000000e+00> : vector<8x128xf32>
      %207 = tpu.matmul %205, %206, %cst_81 {dimension_numbers = #tpu.dot_dimension_numbers<[1], [0], [0], [1], [0, 0, 1, 1], [], []>} : vector<8x512xbf16>, vector<512x128xbf16>, vector<8x128xf32> -> vector<8x128xf32>
      %208 = vector.broadcast %159 : vector<1x128xf32> to vector<8x128xf32>
      %209 = arith.addf %207, %208 : vector<8x128xf32>
      %c0_82 = arith.constant 0 : index
      %c0_83 = arith.constant 0 : index
      %c0_84 = arith.constant 0 : index
      %210 = vector.load %arg12[%c0_82, %c0_83, %c0_84] : memref<1x8x128xf32, #tpu.memory_space<vmem>>, vector<1x8x128xf32>
      %211 = vector.shape_cast %210 : vector<1x8x128xf32> to vector<8x128xf32>
      %212 = vector.shape_cast %209 : vector<8x128xf32> to vector<1x8x128xf32>
      tpu.vector_store %arg12[%c0_82, %c0_83, %c0_84], %212 {strides = array<i32>} : memref<1x8x128xf32, #tpu.memory_space<vmem>>, vector<1x8x128xf32>,
    } else {
    }
    return
  }
  func.func @transform_0(%arg0: i32, %arg1: i32) -> (i32, i32, i32) {
    %c0_i32 = arith.constant 0 : i32
    %c0_i32_0 = arith.constant 0 : i32
    %c0_i32_1 = arith.constant 0 : i32
    return %arg0, %c0_i32, %c0_i32_0 : i32, i32, i32
  }
  func.func @transform_1(%arg0: i32, %arg1: i32) -> (i32, i32, i32) {
    %c0_i32 = arith.constant 0 : i32
    %c0_i32_0 = arith.constant 0 : i32
    %c0_i32_1 = arith.constant 0 : i32
    return %arg0, %c0_i32, %c0_i32_0 : i32, i32, i32
  }
  func.func @transform_2(%arg0: i32, %arg1: i32) -> (i32, i32, i32) {
    %c0_i32 = arith.constant 0 : i32
    %c0_i32_0 = arith.constant 0 : i32
    %c0_i32_1 = arith.constant 0 : i32
    return %arg1, %c0_i32, %c0_i32_0 : i32, i32, i32
  }
  func.func @transform_3(%arg0: i32, %arg1: i32) -> (i32, i32, i32) {
    %c0_i32 = arith.constant 0 : i32
    %c0_i32_0 = arith.constant 0 : i32
    %c0_i32_1 = arith.constant 0 : i32
    return %arg1, %c0_i32, %c0_i32_0 : i32, i32, i32
  }
  func.func @transform_4(%arg0: i32, %arg1: i32) -> (i32, i32, i32) {
    %c0_i32 = arith.constant 0 : i32
    %c0_i32_0 = arith.constant 0 : i32
    %c0_i32_1 = arith.constant 0 : i32
    return %arg1, %c0_i32, %c0_i32_0 : i32, i32, i32
  }
  func.func @transform_5(%arg0: i32, %arg1: i32) -> (i32, i32, i32) {
    %c0_i32 = arith.constant 0 : i32
    %c0_i32_0 = arith.constant 0 : i32
    %c0_i32_1 = arith.constant 0 : i32
    return %arg1, %c0_i32, %c0_i32_0 : i32, i32, i32
  }
  func.func @transform_6(%arg0: i32, %arg1: i32) -> (i32, i32, i32) {
    %c0_i32 = arith.constant 0 : i32
    %c0_i32_0 = arith.constant 0 : i32
    %c0_i32_1 = arith.constant 0 : i32
    return %arg1, %c0_i32, %c0_i32_0 : i32, i32, i32
  }
  func.func @transform_7(%arg0: i32, %arg1: i32) -> (i32, i32) {
    %c0_i32 = arith.constant 0 : i32
    %c0_i32_0 = arith.constant 0 : i32
    %c0_i32_1 = arith.constant 0 : i32
    return %c0_i32, %c0_i32_0 : i32, i32
  }
  func.func @transform_8(%arg0: i32, %arg1: i32) -> (i32, i32) {
    %c0_i32 = arith.constant 0 : i32
    %c0_i32_0 = arith.constant 0 : i32
    %c0_i32_1 = arith.constant 0 : i32
    return %c0_i32, %c0_i32_0 : i32, i32
  }
  func.func @transform_9(%arg0: i32, %arg1: i32) -> (i32, i32) {
    %c0_i32 = arith.constant 0 : i32
    %c0_i32_0 = arith.constant 0 : i32
    %c0_i32_1 = arith.constant 0 : i32
    return %c0_i32, %c0_i32_0 : i32, i32
  }
  func.func @transform_10(%arg0: i32, %arg1: i32) -> (i32, i32, i32) {
    %c0_i32 = arith.constant 0 : i32
    %c0_i32_0 = arith.constant 0 : i32
    %c0_i32_1 = arith.constant 0 : i32
    return %arg0, %c0_i32, %c0_i32_0 : i32, i32, i32
  }
}

</mosaic_0001>

<bundles_post_ra>
// kernel: transformer_forward.1
= control target key start
LH: loop header
LB: loop body
LE: loop exit
PB: predicated region body
PF: predicated region fallthrough
CT: control target
= control target key end

     0   :  { %s4683_s0 = inlined_call_operand.vmem [shape: f32[2,8,128], index: 0, kind: input, shape index: {}]   ;;  %s4684_s1 = inlined_call_operand.vmem [shape: f32[2,1,8], index: 1, kind: input, shape index: {}]   ;;  %s4685_s2 = inlined_call_operand.hbm [shape: bf16[2,128,384], index: 2, kind: input, shape index: {}]   ;;  %s4686_s3 = inlined_call_operand.hbm [shape: bf16[2,128,128], index: 3, kind: input, shape index: {}]   ;;  %s4687_s4 = inlined_call_operand.vmem [shape: bf16[2,128,512], index: 4, kind: input, shape index: {}]   ;;  %s4688_s5 = inlined_call_operand.hbm [shape: bf16[2,512,128], index: 5, kind: input, shape index: {}]   ;;  %s4689_s6 = inlined_call_operand.hbm [shape: f32[2,8,512], index: 6, kind: input, shape index: {}]   ;;  %s4690_s7 = inlined_call_operand.hbm [shape: bf16[128,512], index: 7, kind: input, shape index: {}]   ;;  %s4691_s8 = inlined_call_operand.hbm [shape: bf16[512,128], index: 8, kind: input, shape index: {}]   ;;  %s4692_s9 = inlined_call_operand.vmem [shape: f32[8,512], index: 9, kind: input, shape index: {}]   ;;  %s4693_s10 = inlined_call_operand.hbm [shape: f32[2,8,128], index: 10, kind: output, shape index: {}]  }
   0x1   :  { %4720 = sst [smem:[#allocation32_spill]] %s4683_s0 }
   0x2   :  { %4721 = sst [smem:[#allocation33_spill]] %s4684_s1 }
   0x3   :  { %4722 = sst [smem:[#allocation34_spill]] %s4685_s2 }
   0x4   :  { %4723 = sst [smem:[#allocation35_spill]] %s4686_s3 }
   0x5   :  { %4724 = sst [smem:[#allocation36_spill]] %s4687_s4 }
   0x6   :  { %4725 = sst [smem:[#allocation37_spill]] %s4690_s7 }
   0x7   :  { %4726 = sst [smem:[#allocation38_spill]] %s4692_s9 }
   0x8   :  { %4727 = sst [smem:[#allocation39_spill]] %s4693_s10 }
   0x9   :  { %15 = vsyncpa [#allocation4], 0 }
   0xa   :  { %17 = vsyncpa [#allocation4 + $0x1], 0 }
   0xb   :  { %18 = vsyncpa [#allocation7], 0 }
   0xc   :  { %20 = vsyncpa [#allocation7 + $0x1], 0 }
   0xd   :  { %21 = vsyncpa [#allocation10], 0 }
   0xe   :  { %23 = vsyncpa [#allocation10 + $0x1], 0 }
   0xf   :  { %24 = vsyncpa [#allocation13], 0 }
  0x10   :  { %25 = vsyncpa [#allocation5], 0 }
  0x11   :  { %27 = vsyncpa [#allocation5 + $0x1], 0  ;;  %s3967_s13 = smov 0   ;;  %s3969_s14 = smov 0  }
  0x12   :  { %s3971_s15 = smov 0   ;;  %s3973_s16 = smov 0  }
  0x13   :  { %s3975_s17 = smov 0   ;;  %s3977_s18 = smov 0  }
  0x14   :  { %s3979_s19 = smov 0   ;;  %s3981_s20 = smov 0  }
  0x15   :  { %s3983_s21 = smov 0   ;;  %s3985_s22 = smov 0  }
  0x16   :  { %s3987_s23 = smov 0  }
  0x17 LB: > { %4728 = sst [smem:[#allocation21_spill]] %s3852_s13  ;;  %s4021_s24 = sadd.s32 4294967295, %s3892_s23   ;;  %s3892_s23 = sphi %s3987_s23, %s33_s23   ;;  %s3888_s22 = sphi %s3985_s22, %s4787_s22   ;;  %s3884_s21 = sphi %s3983_s21, %s4794_s21   ;;  %s3880_s20 = sphi %s3981_s20, %s4785_s20   ;;  %s3876_s19 = sphi %s3979_s19, %s4793_s19   ;;  %s3872_s18 = sphi %s3977_s18, %s4784_s18   ;;  %s3868_s17 = sphi %s3975_s17, %s4792_s17   ;;  %s3864_s16 = sphi %s3973_s16, %s4791_s16   ;;  %s3860_s15 = sphi %s3971_s15, %s4790_s15   ;;  %s3856_s14 = sphi %s3969_s14, %s4789_s14   ;;  %s3852_s13 = sphi %s3967_s13, %s4788_s13  }
  0x18   : > { %4729 = sst [smem:[#allocation22_spill]] %s3872_s18  ;;  %s2828_s25 = sadd.s32 4294967294, %s3892_s23  }
  0x19   : > { %4730 = sst [smem:[#allocation23_spill]] %s3876_s19  ;;  %p111_p0 = scmp.ne.s32.totalorder %s3872_s18, %s3868_s17 }
  0x1a   : > { %4731 = sst [smem:[#allocation24_spill]] %s3880_s20  ;;  %p112_p1 = scmp.eq.s32.totalorder %s3892_s23, 0 }
  0x1b   : > { %4732 = sst [smem:[#allocation25_spill]] %s3888_s22  ;;  %p117_p2 = scmp.ne.s32.totalorder %s3868_s17, %s3864_s16 }
  0x1c   : > { %p4700_p3 = scmp.eq.s32.totalorder %s4021_s24, 0  ;;  %p4031_p4 = por %p112_p1, %p111_p0 }
  0x1d   : > { %p307_p5 = scmp.ne.s32.totalorder %s3860_s15, %s3856_s14  ;;  %p308_p7 = scmp.eq.s32.totalorder %s4021_s24, 3 }
  0x1e   : > { %s4733_s28 = scalar_select %p4031_p4, 1, 0 }
  0x1f   : > { %p4039_p6 = por %p4700_p3, %p117_p2  ;;  %p313_p8 = scmp.ne.s32.totalorder %s3856_s14, %s3852_s13 }
  0x20   : > { %p314_p9 = scmp.eq.s32.totalorder %s2828_s25, 3  ;;  %p4046_p10 = por %p308_p7, %p307_p5 }
  0x21   : > { %s4734_s29 = scalar_select %p4039_p6, 1, 0 }
  0x22   : > { %s4735_s30 = scalar_select %p4046_p10, 1, 0 }
  0x23   : > { %p2829_p11 = scmp.ge.s32.totalorder %s3892_s23, 1  ;;  %p4051_p12 = por %p314_p9, %p313_p8 }
  0x24   : > { %4736 = sst [smem:[#allocation26_spill]] %s4735_s30  ;;  %p321_p13 = scmp.lt.s32.totalorder %s3892_s23, 5 }
  0x25   : > { %s4737_s11 = scalar_select %p4051_p12, 1, 0 }
  0x26   : > { %p4056_p0 = pnand %p2829_p11, %p321_p13  ;;  %s3894_s16 = smov [#allocation11]  }
  0x27   : > { %4738 = sst [smem:[#allocation27_spill]] %s4737_s11  ;;  %s333_s27 = sshll.u32 %s3894_s16, 4  ;;  %s334_s27 = int_to_ptr.vmem [resolvable:$true] %s333_s27 }
  0x28   : > { %s4739_s12 = scalar_select %p4056_p0, 1, 0 }
  0x29   : > { %p3207_p1 = pneg %p4056_p0  ;;  %s42_s26 = sadd.s32 1, %s3884_s21 }
  0x2a   : > { %s4741_s7 = sld [smem:[#allocation37_spill]] }
  0x2b   : > { %p4064_p2 = pnand %p3207_p1, %p4700_p3 }
  0x2d   : > { %s4740_s25 = scalar_select %p4064_p2, 1, 0 }
  0x2e   : > { %p4709_p7 = pneg %p4064_p2 }
  0x30   : > { %s3578_s10 = scalar_lea.hbm %s4741_s7, 4096 }
  0x31   : > { %p3579_p5 = scmp.ne.s32.totalorder %s4741_s7, %s3578_s10  ;;  %p3585_p11 = scmp.lt.u32.totalorder %s3578_s10, %s4741_s7 }
  0x33   : > { %p3581_p8 = pnand %p4709_p7, %p3579_p5 }
  0x35   : > { %p3582_p9 = pneg %p3581_p8 }
  0x37   : > { %p3587_p13 = pnand %p3585_p11, %p3582_p9 }
  0x39   : > { %3590 = shalt.err (!%p3587_p13)
}
  0x3a   : > { %s3591_s0 = scalar_lea.vmem %s334_s27, 4096  ;;  %p3599_p10 = scmp.lt.s32.totalorder %s334_s27, %s334_s27 }
  0x3b   : > { %p3592_p1 = scmp.ne.s32.totalorder %s334_s27, %s3591_s0  ;;  %p3600_p6 = scmp.lt.s32.totalorder %s3591_s0, %s3591_s0 }
  0x3d   : > { %p3594_p3 = pnand %p3592_p1, %p4709_p7  ;;  %p3601_p0 = por %p3600_p6, %p3599_p10 }
  0x3f   : > { %p3595_p12 = pneg %p3594_p3 }
  0x41   : > { %p3602_p4 = pnand %p3601_p0, %p3595_p12 }
  0x43   : > { %3605 = shalt.err (!%p3602_p4)
}
  0x44   : > { %s3895_s9 = smov 256   ;;  %s3896_s4 = smov 16  }
  0x45   : > { %3210 = dma.hbm_to_vmem [thread:$0]  (!%p4064_p2), %s4741_s7, 4096, %s334_s27, [#allocation10], %s3895_s9, %s3895_s9, %s3896_s4  }
  0x46   : > { %p43_p3 = scmp.ge.s32.totalorder %s42_s26, 2  ;;  %s45_s0 = sadd.s32 1, %s3888_s22 }
  0x47   : > { %p3233_p4 = scmp.lt.s32.totalorder %s3892_s23, 4  ;;  %s4099_s11 = sand.u32 1, %s3872_s18  }
  0x48   : > { %s4796_s26 = smov (%p43_p3, %s42_s26), 0  ;;  %s4798_s0 = smov (!%p43_p3, %s45_s0), %s3888_s22 }
  0x49   : > { %4742 = sst [smem:[#allocation28_spill]] %s4796_s26  ;;  %s101_s30 = ssub.s32 %s3884_s21, %s4796_s26 }
  0x4a   : > { %p47_p6 = scmp.ge.s32.totalorder %s4798_s0, 2  ;;  %p102_p10 = scmp.eq.s32.totalorder %s101_s30, 0 }
  0x4b   : > { %p4743_p12 = scmp.ne.s32.totalorder %s4733_s28, 0  ;;  %s4746_s16 = sadd.s32 1, %s3872_s18 }
  0x4c   : > { %s4800_s0 = smov (%p47_p6, %s4798_s0), 0  ;;  %s4708_s10 = sand.u32 1, %s3892_s23  }
  0x4d   : > { %p4103_p0 = pnand %p3233_p4, %p4743_p12  ;;  %4745 = sst [smem:[#allocation29_spill]] %s4800_s0 }
  0x4e   : > { %s4112_s9 = scalar_select %p102_p10, %s3872_s18, %s4746_s16  }
  0x4f   : > { %s4744_s27 = scalar_select %p4103_p0, 1, 0 }
  0x50   : > { %4747 = sst [smem:[#allocation30_spill]] %s4112_s9  ;;  %s294_s4 = ssub.s32 %s3888_s22, %s4800_s0 }
  0x51   : > { %p295_p5 = scmp.eq.s32.totalorder %s294_s4, 0  ;;  %s2834_s13 = sshll.u32 %s4099_s11, 6 }
  0x52   : > { %s4748_s30 = sadd.s32 1, %s3860_s15  ;;  %s3020_s28 = sshll.u32 %s3884_s21, 10 }
  0x53   : > { %s4121_s7 = scalar_select %p295_p5, %s3860_s15, %s4748_s30  }
  0x54   : > { %s4750_s3 = sld [smem:[#allocation35_spill]]  ;;  %s401_s20 = scalar_lea.vmem [#allocation6], %s2834_s13 }
  0x55   : > { %4749 = sst [smem:[#allocation31_spill]] %s4121_s7  ;;  %s408_s16 = sshll.u32 %s401_s20, 4  ;;  %s4129_s16 = int_to_ptr.vmem [resolvable:$true] %s408_s16 }
  0x56   : > { %s4133_s4 = scalar_lea.sflag [#allocation7], %s4708_s10  ;;  %p4139_p9 = pneg %p4103_p0 }
  0x58   : > { %s4751_s30 = scalar_select %p4139_p9, 1, 0 }
  0x5a   : > { %s4127_s19 = scalar_lea.hbm %s4750_s3, %s3020_s28  ;;  %s3611_s20 = scalar_lea.hbm %s4750_s3, 2048 }
  0x5b   : > { %s3606_s0 = scalar_lea.hbm %s4127_s19, 1024  ;;  %p3612_p1 = scmp.lt.u32.totalorder %s4127_s19, %s4750_s3 }
  0x5c   : > { %p3607_p8 = scmp.ne.s32.totalorder %s4127_s19, %s3606_s0  ;;  %p3613_p3 = scmp.lt.u32.totalorder %s3611_s20, %s3606_s0 }
  0x5d   : > { %p3615_p6 = scmp.lt.u32.totalorder %s3606_s0, %s4127_s19 }
  0x5e   : > { %p3609_p11 = pnand %p4139_p9, %p3607_p8  ;;  %p3614_p4 = por %p3613_p3, %p3612_p1 }
  0x60   : > { %p3610_p13 = pneg %p3609_p11  ;;  %p3616_p10 = por %p3615_p6, %p3614_p4 }
  0x62   : > { %p3617_p12 = pnand %p3616_p10, %p3610_p13 }
  0x64   : > { %3620 = shalt.err (!%p3617_p12)
}
  0x65   : > { %s3621_s10 = scalar_lea.vmem %s4129_s16, 1024  ;;  %s3897_s1 = smov [#allocation6]  }
  0x66   : > { %p3622_p5 = scmp.ne.s32.totalorder %s4129_s16, %s3621_s10  ;;  %s3626_s26 = sshll.u32 %s3897_s1, 4  ;;  %s3627_s26 = int_to_ptr.vmem [resolvable:$false] %s3626_s26 }
  0x67   : > { %s3628_s13 = scalar_lea.vmem %s3627_s26, 2048  ;;  %p3629_p7 = scmp.lt.s32.totalorder %s4129_s16, %s3627_s26 }
  0x68   : > { %p3624_p8 = pnand %p3622_p5, %p4139_p9  ;;  %p3630_p2 = scmp.lt.s32.totalorder %s3628_s13, %s3621_s10 }
  0x6a   : > { %p3625_p11 = pneg %p3624_p8  ;;  %p3631_p1 = por %p3630_p2, %p3629_p7 }
  0x6c   : > { %p3632_p3 = pnand %p3631_p1, %p3625_p11 }
  0x6e   : > { %3635 = shalt.err (!%p3632_p3)
}
  0x6f   : > { %s3898_s0 = smov 64   ;;  %s3899_s20 = smov 4  }
  0x70   : > { %3220 = dma.hbm_to_vmem [thread:$0]  (!%p4103_p0), %s4127_s19, 1024, %s4129_s16, %s4133_s4, %s3898_s0, %s3898_s0, %s3899_s20  }
  0x71   : > { %s3900_s28 = smov [#allocation12]   ;;  %s3186_s10 = smul.u32 192, %s4099_s11 }
  0x72   : > { %s346_s1 = sshll.u32 %s3900_s28, 4  ;;  %s3636_s3 = scalar_lea.hbm %s4691_s8, 4096  ;;  %s347_s1 = int_to_ptr.vmem [resolvable:$true] %s346_s1 }
  0x73   : > { %p3637_p2 = scmp.ne.s32.totalorder %s4691_s8, %s3636_s3  ;;  %p4752_p7 = scmp.ne.s32.totalorder %s4740_s25, 0 }
  0x74   : > { %p3643_p10 = scmp.lt.u32.totalorder %s3636_s3, %s4691_s8 }
  0x75   : > { %p4753_p13 = pneg %p4752_p7 }
  0x77   : > { %p3639_p4 = pnand %p3637_p2, %p4753_p13 }
  0x79   : > { %p3640_p6 = pneg %p3639_p4 }
  0x7b   : > { %p3645_p12 = pnand %p3643_p10, %p3640_p6 }
  0x7d   : > { %3648 = shalt.err (!%p3645_p12)
}
  0x7e   : > { %s3649_s19 = scalar_lea.vmem %s347_s1, 4096  ;;  %p4754_p8 = pmov %p4753_p13 }
  0x7f   : > { %p3650_p5 = scmp.ne.s32.totalorder %s347_s1, %s3649_s19  ;;  %p3657_p3 = scmp.lt.s32.totalorder %s347_s1, %s347_s1 }
  0x80   : > { %p3658_p0 = scmp.lt.s32.totalorder %s3649_s19, %s3649_s19 }
  0x81   : > { %p3652_p11 = pnand %p3650_p5, %p4754_p8 }
  0x82   : > { %p3659_p9 = por %p3658_p0, %p3657_p3 }
  0x83   : > { %p3653_p1 = pneg %p3652_p11 }
  0x85   : > { %p3660_p2 = pnand %p3659_p9, %p3653_p1 }
  0x87   : > { %3663 = shalt.err (!%p3660_p2)
}
  0x88   : > { %3213 = dma.hbm_to_vmem [thread:$0]  (!%p4752_p7), %s4691_s8, 4096, %s347_s1, [#allocation13], %s3898_s0, %s3898_s0, %s3899_s20  }
  0x89   : > { %s3187_s18 = smul.u32 3072, %s3884_s21  ;;  %s380_s22 = scalar_lea.vmem [#allocation3], %s3186_s10 }
  0x8a   : > { %s387_s9 = sshll.u32 %s380_s22, 4  ;;  %s4755_s2 = sld [smem:[#allocation34_spill]]  ;;  %s4196_s9 = int_to_ptr.vmem [resolvable:$true] %s387_s9 }
  0x8b   : > { %s2837_s25 = sshll.u32 %s4099_s11, 8  ;;  %s377_s13 = scalar_lea.sflag [#allocation4], %s4099_s11 }
  0x8c   : > { %p4756_p9 = scmp.ne.s32.totalorder %s4751_s30, 0 }
  0x90   : > { %s4194_s26 = scalar_lea.hbm %s4755_s2, %s3187_s18  ;;  %s3669_s3 = scalar_lea.hbm %s4755_s2, 6144 }
  0x91   : > { %s3664_s19 = scalar_lea.hbm %s4194_s26, 3072  ;;  %p3670_p4 = scmp.lt.u32.totalorder %s4194_s26, %s4755_s2 }
  0x92   : > { %p3665_p0 = scmp.ne.s32.totalorder %s4194_s26, %s3664_s19  ;;  %p3671_p6 = scmp.lt.u32.totalorder %s3669_s3, %s3664_s19 }
  0x93   : > { %p3673_p12 = scmp.lt.u32.totalorder %s3664_s19, %s4194_s26 }
  0x94   : > { %p3667_p7 = pnand %p3665_p0, %p4756_p9  ;;  %p3672_p10 = por %p3671_p6, %p3670_p4 }
  0x96   : > { %p3668_p13 = pneg %p3667_p7  ;;  %p3674_p5 = por %p3673_p12, %p3672_p10 }
  0x98   : > { %p3675_p8 = pnand %p3674_p5, %p3668_p13 }
  0x9a   : > { %3678 = shalt.err (!%p3675_p8)
}
  0x9b   : > { %s3679_s22 = scalar_lea.vmem %s4196_s9, 3072  ;;  %s3901_s16 = smov [#allocation3]  }
  0x9c   : > { %p3680_p11 = scmp.ne.s32.totalorder %s4196_s9, %s3679_s22  ;;  %s3684_s28 = sshll.u32 %s3901_s16, 4  ;;  %s3685_s28 = int_to_ptr.vmem [resolvable:$false] %s3684_s28 }
  0x9d   : > { %s3686_s1 = scalar_lea.vmem %s3685_s28, 6144  ;;  %p3687_p2 = scmp.lt.s32.totalorder %s4196_s9, %s3685_s28 }
  0x9e   : > { %p3682_p1 = pnand %p3680_p11, %p4756_p9  ;;  %p3688_p0 = scmp.lt.s32.totalorder %s3686_s1, %s3679_s22 }
  0xa0   : > { %p3683_p3 = pneg %p3682_p1  ;;  %p3689_p7 = por %p3688_p0, %p3687_p2 }
  0xa2   : > { %p3690_p4 = pnand %p3689_p7, %p3683_p3 }
  0xa4   : > { %3693 = shalt.err (!%p3690_p4)
}
  0xa5   : > { %s3902_s19 = smov 192   ;;  %s3903_s10 = smov 12  }
  0xa6   : > { %p4757_p13 = scmp.ne.s32.totalorder %s4744_s27, 0  ;;  %s3021_s3 = sshll.u32 %s3884_s21, 12 }
  0xa7   : > { %s4227_s22 = scalar_lea.hbm %s4688_s5, %s3021_s3  ;;  %s430_s16 = scalar_lea.vmem [#allocation8], %s2837_s25 }
  0xa8   : > { %3217 = dma.hbm_to_vmem [thread:$0]  (!%p4757_p13), %s4194_s26, 3072, %s4196_s9, %s377_s13, %s3902_s19, %s3902_s19, %s3903_s10  }
  0xa9   : > { %s437_s28 = sshll.u32 %s430_s16, 4  ;;  %s3694_s1 = scalar_lea.hbm %s4227_s22, 4096  ;;  %s4231_s28 = int_to_ptr.vmem [resolvable:$true] %s437_s28 }
  0xaa   : > { %p3695_p6 = scmp.ne.s32.totalorder %s4227_s22, %s3694_s1  ;;  %s3699_s13 = scalar_lea.hbm %s4688_s5, 8192 }
  0xab   : > { %p3700_p5 = scmp.lt.u32.totalorder %s4227_s22, %s4688_s5  ;;  %p3701_p8 = scmp.lt.u32.totalorder %s3699_s13, %s3694_s1 }
  0xac   : > { %p3697_p10 = pnand %p3695_p6, %p4756_p9  ;;  %p3703_p1 = scmp.lt.u32.totalorder %s3694_s1, %s4227_s22 }
  0xad   : > { %p3702_p11 = por %p3701_p8, %p3700_p5 }
  0xae   : > { %p3698_p12 = pneg %p3697_p10 }
  0xaf   : > { %p3704_p3 = por %p3703_p1, %p3702_p11 }
  0xb1   : > { %p3705_p2 = pnand %p3704_p3, %p3698_p12 }
  0xb3   : > { %3708 = shalt.err (!%p3705_p2)
}
  0xb4   : > { %s3709_s25 = scalar_lea.vmem %s4231_s28, 4096  ;;  %s3904_s3 = smov [#allocation8]  }
  0xb5   : > { %p3710_p0 = scmp.ne.s32.totalorder %s4231_s28, %s3709_s25  ;;  %s3714_s7 = sshll.u32 %s3904_s3, 4  ;;  %s3715_s7 = int_to_ptr.vmem [resolvable:$false] %s3714_s7 }
  0xb6   : > { %s3716_s18 = scalar_lea.vmem %s3715_s7, 8192  ;;  %p3717_p6 = scmp.lt.s32.totalorder %s4231_s28, %s3715_s7 }
  0xb7   : > { %p3712_p7 = pnand %p3710_p0, %p4756_p9  ;;  %p3718_p10 = scmp.lt.s32.totalorder %s3716_s18, %s3709_s25 }
  0xb9   : > { %p3713_p4 = pneg %p3712_p7  ;;  %p3719_p5 = por %p3718_p10, %p3717_p6 }
  0xbb   : > { %p3720_p8 = pnand %p3719_p5, %p3713_p4 }
  0xbd   : > { %3723 = shalt.err (!%p3720_p8)
}
  0xbe   : > { %3223 = dma.hbm_to_vmem [thread:$0]  (!%p4757_p13), %s4227_s22, 4096, %s4231_s28, %s4133_s4, %s3898_s0, %s3898_s0, %s3899_s20  }
  0xbf   : > { %s2840_s16 = sshll.u32 %s4099_s11, 5  ;;  %s3022_s1 = sshll.u32 %s3884_s21, 9 }
  0xc0   : > { %s4263_s13 = scalar_lea.hbm %s4689_s6, %s3022_s1  ;;  %s451_s19 = scalar_lea.vmem [#allocation9], %s2840_s16 }
  0xc1   : > { %s459_s10 = sshll.u32 %s451_s19, 4  ;;  %s4758_s25 = sand.u32 1, %s3892_s23   ;;  %s460_s10 = int_to_ptr.vmem [resolvable:$true] %s459_s10 }
  0xc2   : > { %s448_s3 = scalar_lea.sflag [#allocation10], %s4758_s25  ;;  %s3724_s7 = scalar_lea.hbm %s4263_s13, 512 }
  0xc3   : > { %p3725_p12 = scmp.ne.s32.totalorder %s4263_s13, %s3724_s7  ;;  %s3729_s0 = scalar_lea.hbm %s4689_s6, 1024 }
  0xc4   : > { %p3730_p3 = scmp.lt.u32.totalorder %s4263_s13, %s4689_s6  ;;  %p3731_p2 = scmp.lt.u32.totalorder %s3729_s0, %s3724_s7 }
  0xc5   : > { %p3727_p11 = pnand %p3725_p12, %p4756_p9  ;;  %p3733_p7 = scmp.lt.u32.totalorder %s3724_s7, %s4263_s13 }
  0xc6   : > { %p3732_p0 = por %p3731_p2, %p3730_p3 }
  0xc7   : > { %p3728_p1 = pneg %p3727_p11 }
  0xc8   : > { %p3734_p4 = por %p3733_p7, %p3732_p0 }
  0xca   : > { %p3735_p6 = pnand %p3734_p4, %p3728_p1 }
  0xcc   : > { %3738 = shalt.err (!%p3735_p6)
}
  0xcd   : > { %s3739_s28 = scalar_lea.vmem %s460_s10, 512  ;;  %s3905_s18 = smov [#allocation9]  }
  0xce   : > { %p3740_p10 = scmp.ne.s32.totalorder %s460_s10, %s3739_s28  ;;  %s3744_s16 = sshll.u32 %s3905_s18, 4  ;;  %s3745_s16 = int_to_ptr.vmem [resolvable:$false] %s3744_s16 }
  0xcf   : > { %s3746_s1 = scalar_lea.vmem %s3745_s16, 1024  ;;  %p3747_p12 = scmp.lt.s32.totalorder %s460_s10, %s3745_s16 }
  0xd0   : > { %p3742_p5 = pnand %p3740_p10, %p4756_p9  ;;  %p3748_p11 = scmp.lt.s32.totalorder %s3746_s1, %s3739_s28 }
  0xd2   : > { %p3743_p8 = pneg %p3742_p5  ;;  %p3749_p13 = por %p3748_p11, %p3747_p12 }
  0xd4   : > { %p3750_p2 = pnand %p3749_p13, %p3743_p8 }
  0xd6   : > { %3753 = shalt.err (!%p3750_p2)
}
  0xd7   : > { %p4759_p3 = scmp.ne.s32.totalorder %s4744_s27, 0  ;;  %p4760_p1 = scmp.ne.s32.totalorder %s4739_s12, 0 }
  0xd8   : > { %s470_s30 = sand.u32 (!%p4760_p1), 1, %s3868_s17   ;;  %p4761_p9 = scmp.ne.s32.totalorder (!%p4760_p1), %s4734_s29, 0 }
  0xd9   : > { %3226 = dma.hbm_to_vmem [thread:$0]  (!%p4759_p3), %s4263_s13, 512, %s460_s10, %s448_s3  }
  0xda   : > { %468 = sbr.rel (%p4760_p1) target bundleno = 3106 (0xc22), region = 60  ;;  %s471_s26 = scalar_lea.sflag (!%p4760_p1), [#allocation4], %s470_s30 }
  0xdb   : > { %s3188_s9 = smul.u32 (!%p4760_p1), 192, %s470_s30 }
  0xdd   : > { %s4287_s19 = scalar_lea.vmem (!%p4760_p1), [#allocation3], %s3188_s9 }
  0xe1   : > { %3827 = dma.done.wait (%p4761_p9), %s471_s26, 3072  }
  0xe2   : > { %3829 = vsyncadd (%p4761_p9), %s471_s26, 4294964224  ;;  %s479_s27 = sand.u32 1, %s4021_s24   ;;  %s2844_s25 = sshll.u32 %s470_s30, 6 }
  0xe3   : > { %s480_s13 = scalar_lea.sflag [#allocation7], %s479_s27  ;;  %s4294_s10 = scalar_lea.vmem [#allocation6], %s2844_s25 }
  0xe4   : > { %3831 = dma.done.wait (%p4761_p9), %s480_s13, 5120  }
  0xe5   : > { %3833 = vsyncadd (%p4761_p9), %s480_s13, 4294962176  ;;  %s2845_s12 = sshll.u32 %s470_s30, 8  ;;  %s2846_s3 = sshll.u32 %s470_s30, 5 }
  0xe6   : > { %s4300_s7 = scalar_lea.vmem [#allocation8], %s2845_s12  ;;  %s498_s11 = scalar_lea.sflag [#allocation10], %s479_s27 }
  0xe7   : > { %s4302_s4 = scalar_lea.vmem [#allocation9], %s2846_s3 }
  0xe8   : > { %3835 = dma.done.wait (%p4761_p9), %s498_s11, 512  }
  0xe9   : > { %3837 = vsyncadd (%p4761_p9), %s498_s11, 4294966784  ;;  %p4762_p13 = scmp.eq.s32.totalorder %s4021_s24, 0 }
  0xeb   : > { %3839 = dma.done.wait (%p4762_p13), [#allocation10], 4096   ;;  %p4763_p0 = pmov %p4762_p13 }
  0xed   : > { %3841 = vsyncadd (%p4763_p0), [#allocation10], 4294963200  ;;  %p4764_p7 = pmov %p4763_p0 }
  0xee   : > { %p4765_p4 = pmov %p4763_p0 }
  0xef   : > { %3843 = dma.done.wait (%p4764_p7), [#allocation13], 4096  }
  0xf0   : > { %3845 = vsyncadd (%p4765_p4), [#allocation13], 4294963200  ;;  %s4766_s0 = sld [smem:[#allocation24_spill]]  ;;  %s4767_s20 = sld [smem:[#allocation23_spill]] }
  0xf1   : > { %s4719_s29 = sand.u32 1, %s3856_s14   ;;  %s4768_s1 = sld [smem:[#allocation33_spill]] }
  0xf2   : > { %s4320_s22 = sshll.u32 %s4719_s29, 3  ;;  %s4769_s27 = sld [smem:[#allocation32_spill]] }
  0xf3   : > { %s4770_s11 = sld [smem:[#allocation36_spill]]  ;;  %s572_s2 = scalar_lea.vmem [#allocation14], %s4320_s22 }
  0xf6   : > { %p573_p6 = scmp.lt.s32.totalorder %s4766_s0, 1  ;;  %p580_p10 = scmp.lt.s32.totalorder %s4767_s20, 1 }
  0xf7   : > { %p2853_p5 = scmp.ne.s32.totalorder %s4767_s20, 0 }
  0xf8   : > { %s4802_s0 = smov (!%p573_p6, %s4766_s0), 1 }
  0xf9   : > { %s581_s28 = scalar_select %p580_p10, %s4767_s20, 1 }
  0xfa   : > { %s2850_s24 = sshll.u32 %s4802_s0, 3  ;;  %s579_s30 = scalar_lea.vmem %s4768_s1, %s4802_s0 }
  0xfb   : > { %s576_s25 = scalar_lea.vmem %s4769_s27, %s2850_s24  ;;  %s3023_s13 = sshll.u32 %s581_s28, 8 }
  0xfc   : > { %s4338_s29 = scalar_lea.vmem %s4770_s11, %s3023_s13  ;;  %589 = sbr.rel (%p2853_p5) target bundleno = 259 (0x103), region = 88  ;;  %v590_v0 = vld [vmem:[%s576_s25] sm:$0xff] (!%p2853_p5) }
  0xfd   : > { %591 = vst [vmem:[#allocation2] sm:$0xff] (!%p2853_p5), %v590_v0 }
 0x103 PF: > { %v3338_v1 = vld [vmem:[%s4287_s19 + $0x4] ss:$12 sps:$4 sm:$0xff]   ;;  %v3340_v2 = vld [vmem:[%s4287_s19] ss:$12 sps:$4 sm:$0xff]   ;;  %v3906_v3 = vmov 0   ;;  %v3907_v4 = vmov 0.0   ;;  %v633_v29 = vlaneseq }
 0x104   : > { %805 = vmatprep.mubr.bf16.mxu0 %v3906_v3  ;;  %3134 = vmatprep.subr.bf16.mxu1 %v3907_v4  ;;  %v3341_v5 = vld [vmem:[%s4287_s19 + $0x1c] ss:$12 sps:$4 sm:$0xff]   ;;  %v3343_v6 = vld [vmem:[%s4287_s19 + $0x18] ss:$12 sps:$4 sm:$0xff]   ;;  %v3344_v7 = vld [vmem:[%s4287_s19 + $0x34] ss:$12 sps:$4 sm:$0xff]  }
 0x105   : > { %773 = vmatprep.subr.bf16.mxu0 %v3338_v1  ;;  %v3346_v8 = vld [vmem:[%s4287_s19 + $0x30] ss:$12 sps:$4 sm:$0xff]   ;;  %v3347_v9 = vld [vmem:[%s4287_s19 + $0x4c] ss:$12 sps:$4 sm:$0xff]   ;;  %v3349_v10 = vld [vmem:[%s4287_s19 + $0x48] ss:$12 sps:$4 sm:$0xff]  }
 0x106   : > { %774 = vmatpush1.bf16.msra.mxu0 %v3340_v2  ;;  %v3362_v11 = vld [vmem:[%s4287_s19 + $0x8] ss:$12 sps:$4 sm:$0xff]   ;;  %v3350_v12 = vld [vmem:[%s4287_s19 + $0x64] ss:$12 sps:$4 sm:$0xff]   ;;  %v3363_v13 = vld [vmem:[%s4287_s19 + $0x20] ss:$12 sps:$4 sm:$0xff]  }
 0x107   : > { %775 = vmatprep.subr.bf16.mxu0 %v3341_v5  ;;  %3135 = vmatpush3.bf16.msra.mxu1 %v3362_v11  ;;  %v3352_v14 = vld [vmem:[%s4287_s19 + $0x60] ss:$12 sps:$4 sm:$0xff]   ;;  %v3353_v15 = vld [vmem:[%s4287_s19 + $0x7c] ss:$12 sps:$4 sm:$0xff]   ;;  %v3355_v16 = vld [vmem:[%s4287_s19 + $0x78] ss:$12 sps:$4 sm:$0xff]  }
 0x108   : > { %3136 = vmatprep.subr.bf16.mxu1 %v3907_v4  ;;  %v3364_v17 = vld [vmem:[%s4287_s19 + $0x38] ss:$12 sps:$4 sm:$0xff]   ;;  %v3356_v18 = vld [vmem:[%s4287_s19 + $0x94] ss:$12 sps:$4 sm:$0xff]   ;;  %v3365_v19 = vld [vmem:[%s4287_s19 + $0x50] ss:$12 sps:$4 sm:$0xff]  }
 0x109   : > { %v3358_v20 = vld [vmem:[%s4287_s19 + $0x90] ss:$12 sps:$4 sm:$0xff]   ;;  %v3359_v21 = vld [vmem:[%s4287_s19 + $0xac] ss:$12 sps:$4 sm:$0xff]   ;;  %v3366_v22 = vld [vmem:[%s4287_s19 + $0x68] ss:$12 sps:$4 sm:$0xff]  }
 0x10a   : > { %776 = vmatpush1.bf16.msra.mxu0 %v3343_v6  ;;  %v3361_v23 = vld [vmem:[%s4287_s19 + $0xa8] ss:$12 sps:$4 sm:$0xff]   ;;  %v4368_v24 = vld [vmem:[#allocation2] sm:$0xff]  ;;  %v3367_v25 = vld [vmem:[%s4287_s19 + $0x80] ss:$12 sps:$4 sm:$0xff]   ;;  %vm3908_vm0 = vmmov 0  }
 0x10b   : > { %777 = vmatprep.subr.bf16.mxu0 %v3344_v7  ;;  %3137 = vmatpush3.bf16.msra.mxu1 %v3363_v13  ;;  %v600_v26 = vpack.c.bf16 %v4368_v24, %v4368_v24  ;;  %v3368_v27 = vld [vmem:[%s4287_s19 + $0x98] ss:$12 sps:$4 sm:$0xff]   ;;  %v3369_v28 = vld [vmem:[%s4287_s19 + $0xb0] ss:$12 sps:$4 sm:$0xff]   ;;  %v4387_v30 = vshrl.u32 %v633_v29, 7  ;;  %v4393_v32 = vld [vmem:[%s4302_s4 + $0x8] sm:$0xff] }
 0x10c   : > { %3138 = vmatprep.subr.bf16.mxu1 %v3907_v4  ;;  %3150 = vmatprep.mubr.msk.bf16.mxu1 %vm3908_vm0, %v3907_v4  ;;  %v4396_v33 = vld [vmem:[%s4302_s4] sm:$0xff]  ;;  %v4406_v45 = vld [vmem:[%s4302_s4 + $0x10] sm:$0xff]  ;;  %vm920_vm1 = vcmask 1043456   ;;  %v597_v54 = vld [vmem:[%s579_s30] sm:$0x1]  ;;  %vm904_vm3 = vcmask 64512  }
 0x10d   : > { %v4390_v31 = vsub.s32 0, %v4387_v30  ;;  %vm598_vm2 = vcmp.gt.f32.partialorder %v597_v54, 0.5  ;;  %v3909_v55 = vmov -1e+09   ;;  %v3370_v7 = vld [vmem:[%s4294_s10] sm:$0xff]   ;;  %v3376_v13 = vld [vmem:[%s4294_s10 + $0x30] sm:$0xff]  }
 0x10e   : > { %778 = vmatpush1.bf16.msra.mxu0 %v3346_v8  ;;  %v599_v56 = vsel %vm598_vm2, 0.0, %v3909_v55  ;;  %v3371_v8 = vld [vmem:[%s4294_s10 + $0x8] sm:$0xff]   ;;  %v3374_v11 = vld [vmem:[%s4294_s10 + $0x20] sm:$0xff]  }
 0x10f   : > { %779 = vmatprep.subr.bf16.mxu0 %v3347_v9  ;;  %3139 = vmatpush3.bf16.msra.mxu1 %v3364_v17  ;;  %v640_v34 = vrot.slane %v4393_v32, %v4390_v31  ;;  %v636_v35 = vrot.slane %v4396_v33, %v4390_v31  ;;  %v644_v46 = vrot.slane %v4406_v45, %v4390_v31  ;;  %v3372_v9 = vld [vmem:[%s4294_s10 + $0x10] sm:$0xff]   ;;  %v3404_v55 = vld [vmem:[%s4338_s29 + $0x84] ss:$16 sps:$4 sm:$0xff]  }
 0x110   : > { %3140 = vmatprep.subr.bf16.mxu1 %v3907_v4  ;;  %v862_v57 = vrot.slane %v599_v56, %v4390_v31  ;;  %v3399_v54 = vld [vmem:[%s4338_s29 + $0x68] ss:$16 sps:$4 sm:$0xff]   ;;  %v3407_v56 = vld [vmem:[%s4338_s29 + $0x8c] ss:$16 sps:$4 sm:$0xff]  }
 0x112   : > { %780 = vmatpush1.bf16.msra.mxu0 %v3349_v10  ;;  %v3373_v10 = vld [vmem:[%s4294_s10 + $0x18] sm:$0xff]  }
 0x113   : > { %781 = vmatprep.subr.bf16.mxu0 %v3350_v12  ;;  %3141 = vmatpush3.bf16.msra.mxu1 %v3365_v19  ;;  %v3375_v12 = vld [vmem:[%s4294_s10 + $0x28] sm:$0xff]  }
 0x114   : > { %3142 = vmatprep.subr.bf16.mxu1 %v3907_v4 }
 0x116   : > { %782 = vmatpush1.bf16.msra.mxu0 %v3352_v14 }
 0x117   : > { %783 = vmatprep.subr.bf16.mxu0 %v3353_v15  ;;  %3143 = vmatpush3.bf16.msra.mxu1 %v3366_v22 }
 0x118   : > { %3144 = vmatprep.subr.bf16.mxu1 %v3907_v4 }
 0x11a   : > { %784 = vmatpush1.bf16.msra.mxu0 %v3355_v16 }
 0x11b   : > { %785 = vmatprep.subr.bf16.mxu0 %v3356_v18  ;;  %3145 = vmatpush3.bf16.msra.mxu1 %v3367_v25  ;;  %v3377_v18 = vld [vmem:[%s4294_s10 + $0x38] sm:$0xff]   ;;  %s4772_s10 = sld [smem:[#allocation23_spill]] }
 0x11c   : > { %3146 = vmatprep.subr.bf16.mxu1 %v3907_v4 }
 0x11e   : > { %786 = vmatpush1.bf16.msra.mxu0 %v3358_v20 }
 0x11f   : > { %787 = vmatprep.subr.bf16.mxu0 %v3359_v21  ;;  %3147 = vmatpush3.bf16.msra.mxu1 %v3368_v27 }
 0x120   : > { %3148 = vmatprep.subr.bf16.mxu1 %v3907_v4 }
 0x121   : > { %p2951_p8 = scmp.ne.s32.totalorder %s4772_s10, 1 }
 0x122   : > { %788 = vmatpush1.bf16.msra.mxu0 %v3361_v23  ;;  %v983_v23 = vsub.s32 1, %v4387_v30  ;;  %s4773_s0 = sld [smem:[#allocation38_spill]] (!%p2951_p8) }
 0x123   : > { %3166 = vmatprep.subr.bf16.mxu0 %v3907_v4  ;;  %3149 = vmatpush3.bf16.msra.mxu1 %v3369_v28 }
 0x124   : > { %3154 = vmatprep.subr.bf16.mxu1 %v3907_v4  ;;  %v984_v25 = vrot.slane %v4396_v33, %v983_v23 }
 0x125   : > { %806 = vmatmul.mubr.bf16.vlgmr.msra.gmra.mrb[0].mxu0 %v600_v26 }
 0x126   : > { %3182 = vmatprep.mubr.msk.bf16.mxu0 %vm3908_vm0, %v3907_v4  ;;  %3151 = vmatmul.mubr.bf16.vlgmr.msra.gmra.mrb[0].mxu1 %v600_v26 }
 0x127   : > { %3156 = vmatprep.mubr.msk.bf16.mxu1 %vm3908_vm0, %v3907_v4  ;;  %3167 = vmatpush3.bf16.msra.mxu0 %v3370_v7  ;;  %v3423_v7 = vld [vmem:[%s4338_s29 + $0xe8] ss:$16 sps:$4 sm:$0xff]  }
 0x128   : > { %3168 = vmatprep.subr.bf16.mxu0 %v3907_v4 }
 0x12b   : > { %3169 = vmatpush3.bf16.msra.mxu0 %v3371_v8  ;;  %v3425_v8 = vld [vmem:[%s4338_s29 + $0xec] ss:$16 sps:$4 sm:$0xff]  }
 0x12c   : > { %3170 = vmatprep.subr.bf16.mxu0 %v3907_v4 }
 0x12f   : > { %3171 = vmatpush3.bf16.msra.mxu0 %v3372_v9 }
 0x130   : > { %3172 = vmatprep.subr.bf16.mxu0 %v3907_v4 }
 0x133   : > { %3173 = vmatpush3.bf16.msra.mxu0 %v3373_v10 }
 0x134   : > { %3174 = vmatprep.subr.bf16.mxu0 %v3907_v4 }
 0x137   : > { %3175 = vmatpush3.bf16.msra.mxu0 %v3374_v11 }
 0x138   : > { %3176 = vmatprep.subr.bf16.mxu0 %v3907_v4 }
 0x13b   : > { %3177 = vmatpush3.bf16.msra.mxu0 %v3375_v12  ;;  %v1088_v12 = vsub.s32 2, %v4387_v30 }
 0x13c   : > { %3178 = vmatprep.subr.bf16.mxu0 %v3907_v4 }
 0x13f   : > { %3179 = vmatpush3.bf16.msra.mxu0 %v3376_v13  ;;  %v1093_v13 = vsub.s32 3, %v4387_v30 }
 0x140   : > { %3180 = vmatprep.subr.bf16.mxu0 %v3907_v4 }
 0x143   : > { %3181 = vmatpush3.bf16.msra.mxu0 %v3377_v18 }
 0x1f8   : > { %v807_v36 = vpop.f32.mrb[0].mxu0 }
 0x1f9   : > { %v809_v37 = vpop.f32.mrb[1].mxu0  ;;  %v808_v40 = vadd.f32 %v807_v36, %v636_v35  ;;  %v848_v47 = vpop.f32.mrb[0].mxu1  ;;  %v3380_v36 = vld [vmem:[%s4338_s29 + $0x4] ss:$16 sps:$4 sm:$0xff]  }
 0x1fa   : > { %v810_v38 = vadd.f32 %v809_v37, %v640_v34  ;;  %v811_v39 = vpop.f32.mrb[2].mxu0  ;;  %v849_v48 = vadd.f32 %v848_v47, %v644_v46  ;;  %v3152_v49 = vpop.f32.mrb[1].mxu1  ;;  %v3381_v37 = vld [vmem:[%s4338_s29 + $0x8] ss:$16 sps:$4 sm:$0xff]  }
 0x1fb   : > { %v812_v41 = vpop.f32.mrb[3].mxu0  ;;  %v854_v43 = vmul.f32 0.088388346, %v808_v40  ;;  %v851_v50 = vpop.f32.mrb[2].mxu1  ;;  %v3386_v39 = vld [vmem:[%s4338_s29 + $0x24] ss:$16 sps:$4 sm:$0xff]  }
 0x1fc   : > { %v856_v42 = vpack.c.bf16 %v810_v38, %v810_v38  ;;  %v857_v51 = vpack.c.bf16 %v849_v48, %v849_v48  ;;  %v3153_v52 = vpop.f32.mrb[3].mxu1  ;;  %v3383_v38 = vld [vmem:[%s4338_s29 + $0xc] ss:$16 sps:$4 sm:$0xff]   ;;  %v3384_v41 = vld [vmem:[%s4338_s29 + $0x20] ss:$16 sps:$4 sm:$0xff]  }
 0x1fd   : > { %v855_v44 = vpack.c.bf16 %v854_v43, %v854_v43  ;;  %v3389_v40 = vld [vmem:[%s4338_s29 + $0x2c] ss:$16 sps:$4 sm:$0xff]   ;;  %1346 = vmatprep.subr.bf16.mxu0 %v3383_v38  ;;  %v3392_v43 = vld [vmem:[%s4338_s29 + $0x44] ss:$16 sps:$4 sm:$0xff]   ;;  %v3393_v46 = vld [vmem:[%s4338_s29 + $0x48] ss:$16 sps:$4 sm:$0xff]  }
 0x1fe   : > { %3155 = vmatpush3.bf16.xpose.msra.mxu1 %v856_v42  ;;  %v922_v53 = vsel %vm920_vm1, %v857_v51, 0  ;;  %v3387_v42 = vld [vmem:[%s4338_s29 + $0x28] ss:$16 sps:$4 sm:$0xff]   ;;  %v3398_v51 = vld [vmem:[%s4338_s29 + $0x64] ss:$16 sps:$4 sm:$0xff]  }
 0x1ff   : > { %3160 = vmatprep.subr.bf16.mxu1 %v3907_v4  ;;  %v3401_v52 = vld [vmem:[%s4338_s29 + $0x6c] ss:$16 sps:$4 sm:$0xff]   ;;  %v3439_v38 = vld [vmem:[%s4300_s7 + $0xd8] sm:$0xff]  }
 0x205   : > { %3157 = vmatmul.mubr.bf16.vlgmr.msra.gmra.mrb[4].mxu1 %v855_v44  ;;  %v3390_v44 = vld [vmem:[%s4338_s29 + $0x40] ss:$16 sps:$4 sm:$0xff]  }
 0x206   : > { %3162 = vmatprep.mubr.msk.bf16.mxu1 %vm3908_vm0, %v3907_v4  ;;  %3161 = vmatpush3.bf16.msra.mxu1 %v922_v53  ;;  %v3396_v53 = vld [vmem:[%s4338_s29 + $0x60] ss:$16 sps:$4 sm:$0xff]  }
 0x207   : > { %1305 = vmatprep.subr.bf16.mxu1 %v3380_v36  ;;  %v3437_v36 = vld [vmem:[%s4300_s7 + $0x90] sm:$0xff]  }
 0x2d8   : > { %v898_v58 = vpop.f32.mrb[4].mxu1 }
 0x2d9   : > { %v899_v59 = vadd.f32 %v898_v58, %v862_v57  ;;  %v3158_v60 = vpop.f32.mrb[5].mxu1  ;;  %v3402_v57 = vld [vmem:[%s4338_s29 + $0x80] ss:$16 sps:$4 sm:$0xff]   ;;  %v3405_v58 = vld [vmem:[%s4338_s29 + $0x88] ss:$16 sps:$4 sm:$0xff]  }
 0x2da   : > { %v901_v61 = vpop.f32.mrb[6].mxu1  ;;  %v3413_v60 = vld [vmem:[%s4338_s29 + $0xac] ss:$16 sps:$4 sm:$0xff]  }
 0x2db   : > { %v3159_v62 = vpop.f32.mrb[7].mxu1  ;;  %v905_v63 = vsel %vm904_vm3, %v899_v59, -inf  ;;  %v3408_v61 = vld [vmem:[%s4338_s29 + $0xa0] ss:$16 sps:$4 sm:$0xff]  }
 0x2dc   : > { %906 = vmax.xlane.f32.xlu0 %v905_v63  ;;  %v3411_v62 = vld [vmem:[%s4338_s29 + $0xa8] ss:$16 sps:$4 sm:$0xff]   ;;  %v3416_v63 = vld [vmem:[%s4338_s29 + $0xc4] ss:$16 sps:$4 sm:$0xff]  }
 0x369   : > { %v907_v0 = vpop.xlane.xlu0 %906 }
 0x36a   : > { %v908_v1 = vsub.f32 %v899_v59, %v907_v0  ;;  %v3410_v59 = vld [vmem:[%s4338_s29 + $0xa4] ss:$16 sps:$4 sm:$0xff]   ;;  %v3419_v0 = vld [vmem:[%s4338_s29 + $0xcc] ss:$16 sps:$4 sm:$0xff]  }
 0x36c   : > { %v909_v2 = vmul.f32 1.442695, %v908_v1  ;;  %v3414_v1 = vld [vmem:[%s4338_s29 + $0xc0] ss:$16 sps:$4 sm:$0xff]  }
 0x36e   : > { %3458 = vpow2.f32 %v909_v2  ;;  %v3417_v2 = vld [vmem:[%s4338_s29 + $0xc8] ss:$16 sps:$4 sm:$0xff]  }
 0x378   : > { %v3459_v5 = vpop.eup %3458 }
 0x379   : > { %v911_v6 = vsel %vm904_vm3, %v3459_v5, 0.0 }
 0x37a   : > { %912 = vadd.xlane.f32.xlu0 %v911_v6  ;;  %v3420_v6 = vld [vmem:[%s4338_s29 + $0xe0] ss:$16 sps:$4 sm:$0xff]  }
 0x407   : > { %v913_v14 = vpop.xlane.xlu0 %912 }
 0x408   : > { %3460 = vrcp.f32 %v913_v14  ;;  %v1089_v14 = vrot.slane %v4396_v33, %v1088_v12 }
 0x412   : > { %v3461_v15 = vpop.eup %3460 }
 0x413   : > { %v915_v16 = vmul.f32 %v3461_v15, %v3459_v5  ;;  %v3422_v5 = vld [vmem:[%s4338_s29 + $0xe4] ss:$16 sps:$4 sm:$0xff]  }
 0x415   : > { %v916_v17 = vpack.c.bf16 %v915_v16, %v915_v16 }
 0x417   : > { %3163 = vmatmul.mubr.msk.bf16.vlgmr.msra.gmra.mrb[8].mxu1 %vm904_vm3, %v916_v17  ;;  %v1094_v17 = vrot.slane %v4396_v33, %v1093_v13 }
 0x418   : > { %1337 = vmatprep.mubr.bf16.mxu1 %v3906_v3 }
 0x4ea   : > { %v958_v19 = vpop.f32.mrb[8].mxu1 }
 0x4eb   : > { %v964_v20 = vpack.c.bf16 %v958_v19, %v958_v19  ;;  %v3164_v21 = vpop.f32.mrb[9].mxu1 }
 0x4ec   : > { %v961_v22 = vpop.f32.mrb[10].mxu1  ;;  %v3426_v21 = vld [vmem:[%s4300_s7 + $0x40] sm:$0xff]  }
 0x4ed   : > { %v3165_v4 = vpop.f32.mrb[11].mxu1  ;;  %3183 = vmatmul.mubr.bf16.vlgmr.msra.gmra.mrb[4].mxu0 %v964_v20  ;;  %v3427_v22 = vld [vmem:[%s4300_s7 + $0xc0] sm:$0xff]  }
 0x4ee   : > { %1378 = vmatprep.mubr.bf16.mxu0 %v3906_v3  ;;  %v3378_v3 = vld [vmem:[%s4338_s29] ss:$16 sps:$4 sm:$0xff]   ;;  %1347 = vmatpush1.bf16.msra.mxu0 %v3381_v37  ;;  %v3428_v4 = vld [vmem:[%s4300_s7] sm:$0xff]  }
 0x4ef   : > { %1306 = vmatpush1.bf16.msra.mxu1 %v3378_v3  ;;  %1348 = vmatprep.subr.bf16.mxu0 %v3389_v40  ;;  %v3436_v3 = vld [vmem:[%s4300_s7 + $0x10] sm:$0xff]   ;;  %v3438_v37 = vld [vmem:[%s4300_s7 + $0x58] sm:$0xff]  }
 0x4f0   : > { %1307 = vmatprep.subr.bf16.mxu1 %v3386_v39  ;;  %v3440_v39 = vld [vmem:[%s4300_s7 + $0x18] sm:$0xff]  }
 0x4f1   : > { %v3441_v40 = vld [vmem:[%s4300_s7 + $0x98] sm:$0xff]  }
 0x4f2   : > { %1349 = vmatpush1.bf16.msra.mxu0 %v3387_v42  ;;  %v3443_v42 = vld [vmem:[%s4300_s7 + $0xe0] sm:$0xff]  }
 0x4f3   : > { %1308 = vmatpush1.bf16.msra.mxu1 %v3384_v41  ;;  %v3442_v41 = vld [vmem:[%s4300_s7 + $0x60] sm:$0xff]  }
 0x4f4   : > { %1309 = vmatprep.subr.bf16.mxu1 %v3392_v43  ;;  %v3444_v43 = vld [vmem:[%s4300_s7 + $0x20] sm:$0xff]  }
 0x4f7   : > { %1310 = vmatpush1.bf16.msra.mxu1 %v3390_v44  ;;  %v3446_v44 = vld [vmem:[%s4300_s7 + $0x68] sm:$0xff]  }
 0x4f8   : > { %1311 = vmatprep.subr.bf16.mxu1 %v3398_v51  ;;  %v3452_v51 = vld [vmem:[%s4300_s7 + $0x30] sm:$0xff]  }
 0x4fb   : > { %1312 = vmatpush1.bf16.msra.mxu1 %v3396_v53  ;;  %v3454_v53 = vld [vmem:[%s4300_s7 + $0x78] sm:$0xff]  }
 0x4fc   : > { %1313 = vmatprep.subr.bf16.mxu1 %v3404_v55  ;;  %v3456_v55 = vld [vmem:[%s4300_s7 + $0x38] sm:$0xff]  }
 0x4ff   : > { %1314 = vmatpush1.bf16.msra.mxu1 %v3402_v57  ;;  %v1131_v57 = vsub.s32 4, %v4387_v30 }
 0x500   : > { %1315 = vmatprep.subr.bf16.mxu1 %v3410_v59 }
 0x501   : > { %v1132_v59 = vrot.slane %v4396_v33, %v1131_v57 }
 0x503   : > { %1316 = vmatpush1.bf16.msra.mxu1 %v3408_v61  ;;  %v1136_v61 = vrot.slane %v4393_v32, %v1131_v57 }
 0x504   : > { %1317 = vmatprep.subr.bf16.mxu1 %v3416_v63 }
 0x507   : > { %1318 = vmatpush1.bf16.msra.mxu1 %v3414_v1 }
 0x508   : > { %1319 = vmatprep.subr.bf16.mxu1 %v3422_v5 }
 0x50b   : > { %1320 = vmatpush1.bf16.msra.mxu1 %v3420_v6 }
 0x50c   : > { %3046 = vmatprep.subr.bf16.mxu1 %v3426_v21 }
 0x5c0   : > { %v1067_v26 = vpop.f32.mrb[4].mxu0 }
 0x5c1   : > { %v1068_v27 = vadd.f32 %v1067_v26, %v984_v25  ;;  %v3184_v28 = vpop.f32.mrb[5].mxu0  ;;  %v3429_v25 = vld [vmem:[%s4300_s7 + $0x80] sm:$0xff]   ;;  %v3430_v26 = vld [vmem:[%s4300_s7 + $0x48] sm:$0xff]  }
 0x5c2   : > { %v1070_v29 = vpop.f32.mrb[6].mxu0  ;;  %v3432_v28 = vld [vmem:[%s4300_s7 + $0x8] sm:$0xff]  }
 0x5c3   : > { %v3185_v34 = vpop.f32.mrb[7].mxu0  ;;  %v1073_v35 = vadd.f32 %v1068_v27, %v4368_v24  ;;  %v3395_v24 = vld [vmem:[%s4338_s29 + $0x4c] ss:$16 sps:$4 sm:$0xff]   ;;  %v3431_v27 = vld [vmem:[%s4300_s7 + $0xc8] sm:$0xff]  }
 0x5c4   : > { %1350 = vmatprep.subr.bf16.mxu0 %v3395_v24  ;;  %v3433_v29 = vld [vmem:[%s4300_s7 + $0x88] sm:$0xff]   ;;  %v3434_v34 = vld [vmem:[%s4300_s7 + $0x50] sm:$0xff]   ;;  %v3445_v24 = vld [vmem:[%s4300_s7 + $0xa0] sm:$0xff]  }
 0x5c5   : > { %1074 = vadd.xlane.f32.xlu1 %v1073_v35  ;;  %1351 = vmatpush1.bf16.msra.mxu0 %v3393_v46  ;;  %v3447_v46 = vld [vmem:[%s4300_s7 + $0xe8] sm:$0xff]  }
 0x5c6   : > { %1352 = vmatprep.subr.bf16.mxu0 %v3401_v52  ;;  %v3453_v52 = vld [vmem:[%s4300_s7 + $0xb0] sm:$0xff]  }
 0x5c9   : > { %1353 = vmatpush1.bf16.msra.mxu0 %v3399_v54  ;;  %v3455_v54 = vld [vmem:[%s4300_s7 + $0xf8] sm:$0xff]  }
 0x5ca   : > { %1354 = vmatprep.subr.bf16.mxu0 %v3407_v56  ;;  %v3457_v56 = vld [vmem:[%s4300_s7 + $0xb8] sm:$0xff]  }
 0x5cd   : > { %1355 = vmatpush1.bf16.msra.mxu0 %v3405_v58  ;;  %v596_v58 = vld [vmem:[%s4302_s4 + $0x18] sm:$0xff] }
 0x5ce   : > { %1356 = vmatprep.subr.bf16.mxu0 %v3413_v60  ;;  %v1140_v60 = vrot.slane %v4406_v45, %v1131_v57 }
 0x5d1   : > { %1357 = vmatpush1.bf16.msra.mxu0 %v3411_v62  ;;  %v1144_v62 = vrot.slane %v596_v58, %v1131_v57 }
 0x5d2   : > { %1358 = vmatprep.subr.bf16.mxu0 %v3419_v0 }
 0x5d5   : > { %1359 = vmatpush1.bf16.msra.mxu0 %v3417_v2 }
 0x5d6   : > { %1360 = vmatprep.subr.bf16.mxu0 %v3425_v8 }
 0x5d9   : > { %1361 = vmatpush1.bf16.msra.mxu0 %v3423_v7 }
 0x5da   : > { %3068 = vmatprep.subr.bf16.mxu0 %v3427_v22 }
 0x652   : > { %v1075_v47 = vpop.xlane.xlu1 %1074 }
 0x653   : > { %v1077_v48 = vmul.f32 0.0078125, %v1075_v47  ;;  %v3448_v47 = vld [vmem:[%s4300_s7 + $0x28] sm:$0xff]  }
 0x655   : > { %v1078_v49 = vsub.f32 %v1073_v35, %v1077_v48  ;;  %v3435_v35 = vld [vmem:[%s4300_s7 + $0xd0] sm:$0xff]   ;;  %v3449_v48 = vld [vmem:[%s4300_s7 + $0xa8] sm:$0xff]  }
 0x657   : > { %v1079_v50 = vmul.f32 %v1078_v49, %v1078_v49 }
 0x659   : > { %1080 = vadd.xlane.f32.xlu1 %v1079_v50  ;;  %v3451_v50 = vld [vmem:[%s4300_s7 + $0xf0] sm:$0xff]  }
 0x6e6   : > { %v1081_v9 = vpop.xlane.xlu1 %1080 }
 0x6e7   : > { %v1082_v10 = vmul.f32 0.0078125, %v1081_v9 }
 0x6e9   : > { %v1083_v11 = vadd.f32 1e-05, %v1082_v10 }
 0x6eb   : > { %3462 = vrsqrt.f32 %v1083_v11 }
 0x6f5   : > { %v3463_v15 = vpop.eup %3462 }
 0x6f6   : > { %v1085_v16 = vmul.f32 %v3463_v15, %v1078_v49  ;;  %v3450_v49 = vld [vmem:[%s4300_s7 + $0x70] sm:$0xff]  }
 0x6f8   : > { %v1090_v18 = vmul.f32 %v1089_v14, %v1085_v16 }
 0x6fa   : > { %v4477_v19 = vadd.f32 %v1094_v17, %v1090_v18 }
 0x6fc   : > { %v1096_v20 = vpack.c.bf16 %v4477_v19, %v4477_v19 }
 0x6fe   : > { %1338 = vmatmul.mubr.bf16.vlgmr.msra.gmra.mrb[12].mxu1 %v1096_v20  ;;  %1379 = vmatmul.mubr.bf16.vlgmr.msra.gmra.mrb[8].mxu0 %v1096_v20 }
 0x6ff   : > { %3047 = vmatpush3.bf16.msra.mxu1 %v3428_v4  ;;  %3069 = vmatpush3.bf16.msra.mxu0 %v3429_v25 }
 0x700   : > { %3048 = vmatprep.subr.bf16.mxu1 %v3430_v26  ;;  %3070 = vmatprep.subr.bf16.mxu0 %v3431_v27 }
 0x703   : > { %3049 = vmatpush3.bf16.msra.mxu1 %v3432_v28  ;;  %3071 = vmatpush3.bf16.msra.mxu0 %v3433_v29 }
 0x704   : > { %3050 = vmatprep.subr.bf16.mxu1 %v3434_v34  ;;  %3072 = vmatprep.subr.bf16.mxu0 %v3435_v35 }
 0x707   : > { %3051 = vmatpush3.bf16.msra.mxu1 %v3436_v3  ;;  %3073 = vmatpush3.bf16.msra.mxu0 %v3437_v36 }
 0x708   : > { %3052 = vmatprep.subr.bf16.mxu1 %v3438_v37  ;;  %3074 = vmatprep.subr.bf16.mxu0 %v3439_v38 }
 0x70b   : > { %3053 = vmatpush3.bf16.msra.mxu1 %v3440_v39  ;;  %3075 = vmatpush3.bf16.msra.mxu0 %v3441_v40 }
 0x70c   : > { %3054 = vmatprep.subr.bf16.mxu1 %v3442_v41  ;;  %3076 = vmatprep.subr.bf16.mxu0 %v3443_v42 }
 0x70f   : > { %3055 = vmatpush3.bf16.msra.mxu1 %v3444_v43  ;;  %3077 = vmatpush3.bf16.msra.mxu0 %v3445_v24 }
 0x710   : > { %3056 = vmatprep.subr.bf16.mxu1 %v3446_v44  ;;  %3078 = vmatprep.subr.bf16.mxu0 %v3447_v46 }
 0x713   : > { %3057 = vmatpush3.bf16.msra.mxu1 %v3448_v47  ;;  %3079 = vmatpush3.bf16.msra.mxu0 %v3449_v48 }
 0x714   : > { %3058 = vmatprep.subr.bf16.mxu1 %v3450_v49  ;;  %3080 = vmatprep.subr.bf16.mxu0 %v3451_v50 }
 0x717   : > { %3059 = vmatpush3.bf16.msra.mxu1 %v3452_v51  ;;  %3081 = vmatpush3.bf16.msra.mxu0 %v3453_v52 }
 0x718   : > { %3060 = vmatprep.subr.bf16.mxu1 %v3454_v53  ;;  %3082 = vmatprep.subr.bf16.mxu0 %v3455_v54 }
 0x71b   : > { %3061 = vmatpush3.bf16.msra.mxu1 %v3456_v55  ;;  %3083 = vmatpush3.bf16.msra.mxu0 %v3457_v56 }
 0x7d1   : > { %v1339_v63 = vpop.f32.mrb[12].mxu1  ;;  %v1380_v0 = vpop.f32.mrb[8].mxu0 }
 0x7d2   : > { %v4518_v1 = vadd.f32 %v1339_v63, %v1132_v59  ;;  %v4520_v2 = vadd.f32 %v1380_v0, %v1140_v60  ;;  %v1341_v5 = vpop.f32.mrb[13].mxu1  ;;  %v1382_v6 = vpop.f32.mrb[9].mxu0 }
 0x7d3   : > { %v4522_v7 = vadd.f32 %v1341_v5, %v1136_v61  ;;  %v4524_v8 = vadd.f32 %v1382_v6, %v1144_v62  ;;  %v1343_v9 = vpop.f32.mrb[14].mxu1  ;;  %v1384_v10 = vpop.f32.mrb[10].mxu0 }
 0x7d4   : > { %v4527_v11 = vmul.f32 0.70710677, %v4518_v1  ;;  %v4530_v32 = vmul.f32 0.70710677, %v4520_v2  ;;  %v1344_v25 = vpop.f32.mrb[15].mxu1  ;;  %v1385_v26 = vpop.f32.mrb[11].mxu0 }
 0x7d5   : > { %v4533_v45 = vmul.f32 0.70710677, %v4522_v7  ;;  %v4536_v12 = vmul.f32 0.70710677, %v4524_v8 }
 0x7d6   : > { %v1395_v13 = vand.u32 2147483647, %v4527_v11  ;;  %v1397_v14 = vand.u32 2147483647, %v4530_v32  ;;  %vm1475_vm4 = vcmp.ge.f32.partialorder %v4527_v11, 0.0  ;;  %vm1477_vm5 = vcmp.ge.f32.partialorder %v4530_v32, 0.0 }
 0x7d7   : > { %v1396_v15 = vand.u32 2147483647, %v4533_v45  ;;  %v1398_v16 = vand.u32 2147483647, %v4536_v12  ;;  %vm1476_vm6 = vcmp.ge.f32.partialorder %v4533_v45, 0.0  ;;  %vm1478_vm7 = vcmp.ge.f32.partialorder %v4536_v12, 0.0 }
 0x7d8   : > { %v1399_v17 = vmul.f32 0.3275911, %v1395_v13  ;;  %v1401_v18 = vmul.f32 0.3275911, %v1397_v14  ;;  %v1451_v29 = vsub.f32 0.0, %v1395_v13  ;;  %v1453_v34 = vsub.f32 0.0, %v1397_v14 }
 0x7d9   : > { %v1400_v20 = vmul.f32 0.3275911, %v1396_v15  ;;  %v1402_v4 = vmul.f32 0.3275911, %v1398_v16  ;;  %v1452_v36 = vsub.f32 0.0, %v1396_v15  ;;  %v1454_v41 = vsub.f32 0.0, %v1398_v16 }
 0x7da   : > { %v1403_v21 = vadd.f32 1.0, %v1399_v17  ;;  %v1405_v22 = vadd.f32 1.0, %v1401_v18  ;;  %v1455_v3 = vmul.f32 %v1451_v29, %v1395_v13  ;;  %v1457_v39 = vmul.f32 %v1453_v34, %v1397_v14 }
 0x7db   : > { %v1404_v27 = vadd.f32 1.0, %v1400_v20  ;;  %v1406_v28 = vadd.f32 1.0, %v1402_v4  ;;  %v1456_v46 = vmul.f32 %v1452_v36, %v1396_v15  ;;  %v1458_v52 = vmul.f32 %v1454_v41, %v1398_v16 }
 0x7dc   : > { %3464 = vrcp.f32 %v1403_v21  ;;  %v1459_v24 = vmul.f32 1.442695, %v1455_v3  ;;  %v1463_v48 = vmul.f32 1.442695, %v1457_v39  ;;  %v1389_v32 = vmul.f32 0.5, %v4520_v2 }
 0x7dd   : > { %3466 = vrcp.f32 %v1405_v22  ;;  %v1461_v57 = vmul.f32 1.442695, %v1456_v46  ;;  %v1465_v62 = vmul.f32 1.442695, %v1458_v52 }
 0x7de   : > { %3468 = vrcp.f32 %v1404_v27 }
 0x7df   : > { %3470 = vrcp.f32 %v1406_v28 }
 0x7e0   : > { %3472 = vpow2.f32 %v1459_v24 }
 0x7e1   : > { %3474 = vpow2.f32 %v1463_v48 }
 0x7e2   : > { %3476 = vpow2.f32 %v1461_v57 }
 0x7e3   : > { %3478 = vpow2.f32 %v1465_v62 }
 0x7e6   : > { %v3465_v35 = vpop.eup %3464 }
 0x7e7   : > { %v3467_v37 = vpop.eup %3466  ;;  %v1415_v38 = vmul.f32 1.0614054, %v3465_v35 }
 0x7e8   : > { %v1417_v40 = vmul.f32 1.0614054, %v3467_v37  ;;  %v3469_v43 = vpop.eup %3468 }
 0x7e9   : > { %v1419_v42 = vadd.f32 -1.4531521, %v1415_v38  ;;  %v1416_v49 = vmul.f32 1.0614054, %v3469_v43  ;;  %v3471_v50 = vpop.eup %3470 }
 0x7ea   : > { %v1421_v44 = vadd.f32 -1.4531521, %v1417_v40  ;;  %v1418_v55 = vmul.f32 1.0614054, %v3471_v50  ;;  %v3473_v4 = vpop.eup %3472 }
 0x7eb   : > { %v1423_v47 = vmul.f32 %v3465_v35, %v1419_v42  ;;  %v1420_v54 = vadd.f32 -1.4531521, %v1416_v49  ;;  %v3475_v26 = vpop.eup %3474 }
 0x7ec   : > { %v1425_v51 = vmul.f32 %v3467_v37, %v1421_v44  ;;  %v1422_v60 = vadd.f32 -1.4531521, %v1418_v55  ;;  %v3477_v39 = vpop.eup %3476  ;;  %v1388_v55 = vmul.f32 0.5, %v4522_v7  ;;  %v1565_v7 = vsub.s32 5, %v4387_v30 }
 0x7ed   : > { %v1427_v53 = vadd.f32 1.4214138, %v1423_v47  ;;  %v1424_v59 = vmul.f32 %v3469_v43, %v1420_v54  ;;  %v3479_v44 = vpop.eup %3478 }
 0x7ee   : > { %v1429_v56 = vadd.f32 1.4214138, %v1425_v51  ;;  %v1426_v5 = vmul.f32 %v3471_v50, %v1422_v60  ;;  %v1566_v2 = vrot.slane %v4396_v33, %v1565_v7  ;;  %v3528_v7 = vld [vmem:[#allocation11 + $0xe0] ss:$16 sps:$4 sm:$0xff] (!%p2951_p8)  }
 0x7ef   : > { %v1431_v58 = vmul.f32 %v3465_v35, %v1427_v53  ;;  %v1428_v0 = vadd.f32 1.4214138, %v1424_v59 }
 0x7f0   : > { %v1433_v61 = vmul.f32 %v3467_v37, %v1429_v56  ;;  %v1430_v13 = vadd.f32 1.4214138, %v1426_v5 }
 0x7f1   : > { %v1435_v63 = vadd.f32 -0.28449672, %v1431_v58  ;;  %v1432_v10 = vmul.f32 %v3469_v43, %v1428_v0  ;;  %v1390_v58 = vmul.f32 0.5, %v4524_v8 }
 0x7f2   : > { %v1437_v6 = vadd.f32 -0.28449672, %v1433_v61  ;;  %v1434_v17 = vmul.f32 %v3471_v50, %v1430_v13 }
 0x7f3   : > { %v1439_v9 = vmul.f32 %v3465_v35, %v1435_v63  ;;  %v1436_v16 = vadd.f32 -0.28449672, %v1432_v10 }
 0x7f4   : > { %v1441_v14 = vmul.f32 %v3467_v37, %v1437_v6  ;;  %v1438_v22 = vadd.f32 -0.28449672, %v1434_v17 }
 0x7f5   : > { %v1443_v15 = vadd.f32 0.2548296, %v1439_v9  ;;  %v1440_v21 = vmul.f32 %v3469_v43, %v1436_v16 }
 0x7f6   : > { %v1445_v18 = vadd.f32 0.2548296, %v1441_v14  ;;  %v1442_v29 = vmul.f32 %v3471_v50, %v1438_v22 }
 0x7f7   : > { %v1447_v20 = vmul.f32 %v3465_v35, %v1443_v15  ;;  %v1444_v28 = vadd.f32 0.2548296, %v1440_v21 }
 0x7f8   : > { %v1449_v25 = vmul.f32 %v3467_v37, %v1445_v18  ;;  %v1446_v38 = vadd.f32 0.2548296, %v1442_v29  ;;  %v1853_v29 = vsub.s32 6, %v4387_v30 }
 0x7f9   : > { %v1467_v27 = vmul.f32 %v3473_v4, %v1447_v20  ;;  %v1448_v36 = vmul.f32 %v3469_v43, %v1444_v28  ;;  %v1387_v43 = vmul.f32 0.5, %v4518_v1 }
 0x7fa   : > { %v1469_v34 = vmul.f32 %v3475_v26, %v1449_v25  ;;  %v1450_v24 = vmul.f32 %v3471_v50, %v1446_v38 }
 0x7fb   : > { %v1471_v3 = vsub.f32 1.0, %v1467_v27  ;;  %v1468_v42 = vmul.f32 %v3477_v39, %v1448_v36 }
 0x7fc   : > { %v1473_v40 = vsub.f32 1.0, %v1469_v34  ;;  %v1470_v47 = vmul.f32 %v3479_v44, %v1450_v24  ;;  %v1858_v34 = vsub.s32 7, %v4387_v30  ;;  %v3910_v24 = vmov (!%p2951_p8), 0   ;;  %v3486_v44 = vld [vmem:[#allocation11] ss:$16 sps:$4 sm:$0xff] (!%p2951_p8)  }
 0x7fd   : > { %v1479_v41 = vsub.f32 0.0, %v1471_v3  ;;  %v1472_v37 = vsub.f32 1.0, %v1468_v42  ;;  %v3484_v42 = vld [vmem:[#allocation11 + $0xc] ss:$16 sps:$4 sm:$0xff] (!%p2951_p8)  }
 0x7fe   : > { %v1481_v35 = vsub.f32 0.0, %v1473_v40  ;;  %v1474_v52 = vsub.f32 1.0, %v1470_v47  ;;  %v1859_v38 = vrot.slane %v4396_v33, %v1858_v34  ;;  %2120 = vmatprep.subr.bf16.mxu1 (!%p2951_p8), %v3484_v42  ;;  %v3493_v47 = vld [vmem:[#allocation11 + $0x28] ss:$16 sps:$4 sm:$0xff] (!%p2951_p8)  }
 0x7ff   : > { %v1483_v46 = vsel %vm1475_vm4, %v1471_v3, %v1479_v41  ;;  %v1480_v51 = vsub.f32 0.0, %v1472_v37  ;;  %v1854_v3 = vrot.slane %v4396_v33, %v1853_v29  ;;  %v3482_v41 = vld [vmem:[#allocation11 + $0x4] ss:$16 sps:$4 sm:$0xff] (!%p2951_p8)   ;;  %v3490_v33 = vld [vmem:[#allocation11 + $0x2c] ss:$16 sps:$4 sm:$0xff] (!%p2951_p8)  }
 0x800   : > { %v1485_v48 = vsel %vm1477_vm5, %v1473_v40, %v1481_v35  ;;  %v1487_v49 = vadd.f32 1.0, %v1483_v46  ;;  %v1482_v50 = vsub.f32 0.0, %v1474_v52  ;;  %2079 = vmatprep.subr.bf16.mxu0 (!%p2951_p8), %v3482_v41  ;;  %v3487_v35 = vld [vmem:[#allocation11 + $0x8] ss:$16 sps:$4 sm:$0xff] (!%p2951_p8)   ;;  %v3488_v46 = vld [vmem:[#allocation11 + $0x24] ss:$16 sps:$4 sm:$0xff] (!%p2951_p8)  }
 0x801   : > { %v1489_v53 = vadd.f32 1.0, %v1485_v48  ;;  %v1484_v54 = vsel %vm1476_vm6, %v1472_v37, %v1480_v51  ;;  %v3492_v37 = vld [vmem:[#allocation11 + $0x20] ss:$16 sps:$4 sm:$0xff] (!%p2951_p8)   ;;  %v3494_v48 = vld [vmem:[#allocation11 + $0x44] ss:$16 sps:$4 sm:$0xff] (!%p2951_p8)   ;;  %v3550_v34 = vld [vmem:[#allocation12 + $0x68] sm:$0xff] (!%p2951_p8)  }
 0x802   : > { %v1488_v11 = vadd.f32 1.0, %v1484_v54  ;;  %v1491_v56 = vmul.f32 %v1487_v49, %v1387_v43  ;;  %v1486_v57 = vsel %vm1478_vm7, %v1474_v52, %v1482_v50  ;;  %v3496_v49 = vld [vmem:[#allocation11 + $0x4c] ss:$16 sps:$4 sm:$0xff] (!%p2951_p8)   ;;  %v3498_v51 = vld [vmem:[#allocation11 + $0x40] ss:$16 sps:$4 sm:$0xff] (!%p2951_p8)  }
 0x803   : > { %v1490_v60 = vadd.f32 1.0, %v1486_v57  ;;  %v1493_v61 = vmul.f32 %v1489_v53, %v1389_v32  ;;  %v3499_v52 = vld [vmem:[#allocation11 + $0x48] ss:$16 sps:$4 sm:$0xff] (!%p2951_p8)   ;;  %v3500_v43 = vld [vmem:[#allocation11 + $0x64] ss:$16 sps:$4 sm:$0xff] (!%p2951_p8)  }
 0x804   : > { %v1492_v59 = vmul.f32 %v1488_v11, %v1388_v55  ;;  %v1495_v1 = vpack.c.bf16 %v1491_v56, %v1491_v56  ;;  %v3502_v53 = vld [vmem:[#allocation11 + $0x6c] ss:$16 sps:$4 sm:$0xff] (!%p2951_p8)   ;;  %v3504_v54 = vld [vmem:[#allocation11 + $0x60] ss:$16 sps:$4 sm:$0xff] (!%p2951_p8)   ;;  %v3505_v50 = vld [vmem:[#allocation11 + $0x68] ss:$16 sps:$4 sm:$0xff] (!%p2951_p8)  }
 0x805   : > { %v1494_v62 = vmul.f32 %v1490_v60, %v1390_v58  ;;  %v1497_v0 = vpack.c.bf16 %v1493_v61, %v1493_v61  ;;  %v3506_v55 = vld [vmem:[#allocation11 + $0x84] ss:$16 sps:$4 sm:$0xff] (!%p2951_p8)   ;;  %v3508_v11 = vld [vmem:[#allocation11 + $0x8c] ss:$16 sps:$4 sm:$0xff] (!%p2951_p8)   ;;  %v3510_v56 = vld [vmem:[#allocation11 + $0x80] ss:$16 sps:$4 sm:$0xff] (!%p2951_p8)  }
 0x806   : > { %v1496_v45 = vpack.c.bf16 %v1492_v59, %v1492_v59  ;;  %v3511_v32 = vld [vmem:[#allocation11 + $0x88] ss:$16 sps:$4 sm:$0xff] (!%p2951_p8)   ;;  %v3512_v57 = vld [vmem:[#allocation11 + $0xa4] ss:$16 sps:$4 sm:$0xff] (!%p2951_p8)   ;;  %v3514_v58 = vld [vmem:[#allocation11 + $0xac] ss:$16 sps:$4 sm:$0xff] (!%p2951_p8)  }
 0x807   : > { %v1498_v63 = vpack.c.bf16 %v1494_v62, %v1494_v62  ;;  %v3516_v59 = vld [vmem:[#allocation11 + $0xa0] ss:$16 sps:$4 sm:$0xff] (!%p2951_p8)   ;;  %v3517_v60 = vld [vmem:[#allocation11 + $0xa8] ss:$16 sps:$4 sm:$0xff] (!%p2951_p8)   ;;  %v3518_v61 = vld [vmem:[#allocation11 + $0xc4] ss:$16 sps:$4 sm:$0xff] (!%p2951_p8)  }
 0x808   : > { %1791 = vmatprep.mubr.bf16.mxu1 %v1496_v45  ;;  %v3520_v45 = vld [vmem:[#allocation11 + $0xcc] ss:$16 sps:$4 sm:$0xff] (!%p2951_p8)   ;;  %v3522_v62 = vld [vmem:[#allocation11 + $0xc0] ss:$16 sps:$4 sm:$0xff] (!%p2951_p8)  }
 0x809   : > { %1792 = vmatmul.mubr.bf16.vlgmr.msra.gmra.mrb[16].mxu1 %v1495_v1  ;;  %1831 = vmatprep.mubr.bf16.mxu0 %v1498_v63  ;;  %v3523_v1 = vld [vmem:[#allocation11 + $0xc8] ss:$16 sps:$4 sm:$0xff] (!%p2951_p8)   ;;  %v3524_v63 = vld [vmem:[#allocation11 + $0xe4] ss:$16 sps:$4 sm:$0xff] (!%p2951_p8)  }
 0x80a   : > { %1832 = vmatmul.mubr.bf16.vlgmr.msra.gmra.mrb[12].mxu0 %v1497_v0  ;;  %2152 = vmatprep.mubr.bf16.mxu1 (!%p2951_p8), %v3910_v24  ;;  %v3526_v0 = vld [vmem:[#allocation11 + $0xec] ss:$16 sps:$4 sm:$0xff] (!%p2951_p8)   ;;  %v3549_v29 = vld [vmem:[#allocation12 + $0xa0] sm:$0xff] (!%p2951_p8)   ;;  %v3557_v41 = vld [vmem:[#allocation12 + $0xb0] sm:$0xff] (!%p2951_p8)  }
 0x80b   : > { %2111 = vmatprep.mubr.bf16.mxu0 (!%p2951_p8), %v3910_v24  ;;  %2080 = vmatpush1.bf16.msra.mxu0 (!%p2951_p8), %v3486_v44  ;;  %v3558_v42 = vld [vmem:[#allocation12 + $0x78] sm:$0xff] (!%p2951_p8)  }
 0x80c   : > { %2121 = vmatpush1.bf16.msra.mxu1 (!%p2951_p8), %v3487_v35  ;;  %2081 = vmatprep.subr.bf16.mxu0 (!%p2951_p8), %v3488_v46  ;;  %v3559_v24 = vld [vmem:[#allocation12 + $0xf8] sm:$0xff] (!%p2951_p8)  }
 0x80d   : > { %2122 = vmatprep.subr.bf16.mxu1 (!%p2951_p8), %v3490_v33  ;;  %v3560_v44 = vld [vmem:[#allocation12 + $0x38] sm:$0xff] (!%p2951_p8)   ;;  %v1868_v33 = vld [vmem:[%s4773_s0 + $0x10] sm:$0xff] (!%p2951_p8) }
 0x80e   : > { %v3561_v35 = vld [vmem:[#allocation12 + $0xb8] sm:$0xff] (!%p2951_p8)  }
 0x80f   : > { %2082 = vmatpush1.bf16.msra.mxu0 (!%p2951_p8), %v3492_v37  ;;  %v4566_v46 = vld [vmem:[%s4773_s0] sm:$0xff] (!%p2951_p8)  ;;  %v1867_v37 = vld [vmem:[%s4773_s0 + $0x8] sm:$0xff] (!%p2951_p8) }
 0x810   : > { %2123 = vmatpush1.bf16.msra.mxu1 (!%p2951_p8), %v3493_v47  ;;  %2083 = vmatprep.subr.bf16.mxu0 (!%p2951_p8), %v3494_v48  ;;  %v1869_v47 = vld [vmem:[%s4773_s0 + $0x18] sm:$0xff] (!%p2951_p8)  ;;  %v1906_v48 = vrot.slane (!%p2951_p8), %v4566_v46, %v4390_v31 }
 0x811   : > { %2124 = vmatprep.subr.bf16.mxu1 (!%p2951_p8), %v3496_v49  ;;  %v1914_v49 = vrot.slane (!%p2951_p8), %v1868_v33, %v4390_v31 }
 0x813   : > { %2084 = vmatpush1.bf16.msra.mxu0 (!%p2951_p8), %v3498_v51  ;;  %v1910_v51 = vrot.slane (!%p2951_p8), %v1867_v37, %v4390_v31 }
 0x814   : > { %2125 = vmatpush1.bf16.msra.mxu1 (!%p2951_p8), %v3499_v52  ;;  %2085 = vmatprep.subr.bf16.mxu0 (!%p2951_p8), %v3500_v43  ;;  %v1918_v52 = vrot.slane (!%p2951_p8), %v1869_v47, %v4390_v31 }
 0x815   : > { %2126 = vmatprep.subr.bf16.mxu1 (!%p2951_p8), %v3502_v53 }
 0x817   : > { %2086 = vmatpush1.bf16.msra.mxu0 (!%p2951_p8), %v3504_v54 }
 0x818   : > { %2127 = vmatpush1.bf16.msra.mxu1 (!%p2951_p8), %v3505_v50  ;;  %2087 = vmatprep.subr.bf16.mxu0 (!%p2951_p8), %v3506_v55 }
 0x819   : > { %2128 = vmatprep.subr.bf16.mxu1 (!%p2951_p8), %v3508_v11 }
 0x81b   : > { %2088 = vmatpush1.bf16.msra.mxu0 (!%p2951_p8), %v3510_v56 }
 0x81c   : > { %2129 = vmatpush1.bf16.msra.mxu1 (!%p2951_p8), %v3511_v32  ;;  %2089 = vmatprep.subr.bf16.mxu0 (!%p2951_p8), %v3512_v57 }
 0x81d   : > { %2130 = vmatprep.subr.bf16.mxu1 (!%p2951_p8), %v3514_v58 }
 0x81f   : > { %2090 = vmatpush1.bf16.msra.mxu0 (!%p2951_p8), %v3516_v59 }
 0x820   : > { %2131 = vmatpush1.bf16.msra.mxu1 (!%p2951_p8), %v3517_v60  ;;  %2091 = vmatprep.subr.bf16.mxu0 (!%p2951_p8), %v3518_v61 }
 0x821   : > { %2132 = vmatprep.subr.bf16.mxu1 (!%p2951_p8), %v3520_v45 }
 0x823   : > { %2092 = vmatpush1.bf16.msra.mxu0 (!%p2951_p8), %v3522_v62 }
 0x824   : > { %2133 = vmatpush1.bf16.msra.mxu1 (!%p2951_p8), %v3523_v1  ;;  %2093 = vmatprep.subr.bf16.mxu0 (!%p2951_p8), %v3524_v63 }
 0x825   : > { %2134 = vmatprep.subr.bf16.mxu1 (!%p2951_p8), %v3526_v0 }
 0x827   : > { %2094 = vmatpush1.bf16.msra.mxu0 (!%p2951_p8), %v3528_v7 }
 0x8dc   : > { %v3062_v12 = vpop.f32.mrb[16].mxu1 }
 0x8dd   : > { %v3063_v5 = vpop.f32.mrb[17].mxu1  ;;  %v3084_v6 = vpop.f32.mrb[12].mxu0 }
 0x8de   : > { %v3064_v8 = vadd.f32 %v3063_v5, %v3062_v12  ;;  %v3065_v9 = vpop.f32.mrb[18].mxu1  ;;  %v3085_v10 = vpop.f32.mrb[13].mxu0  ;;  %v3529_v12 = vld [vmem:[#allocation11 + $0xe8] ss:$16 sps:$4 sm:$0xff] (!%p2951_p8)   ;;  %v3530_v5 = vld [vmem:[#allocation12 + $0x40] sm:$0xff] (!%p2951_p8)  }
 0x8df   : > { %v3066_v13 = vpop.f32.mrb[19].mxu1  ;;  %v3086_v15 = vadd.f32 %v3085_v10, %v3084_v6  ;;  %v3087_v16 = vpop.f32.mrb[14].mxu0  ;;  %2135 = vmatpush1.bf16.msra.mxu1 (!%p2951_p8), %v3529_v12  ;;  %v3531_v6 = vld [vmem:[#allocation12 + $0xc0] sm:$0xff] (!%p2951_p8)   ;;  %3090 = vmatprep.subr.bf16.mxu0 (!%p2951_p8), %v3530_v5  ;;  %v3534_v10 = vld [vmem:[#allocation12 + $0x48] sm:$0xff] (!%p2951_p8)  }
 0x8e0   : > { %v1794_v14 = vadd.f32 %v3064_v8, %v1566_v2  ;;  %v3088_v17 = vpop.f32.mrb[15].mxu0  ;;  %v3532_v8 = vld [vmem:[#allocation12] sm:$0xff] (!%p2951_p8)   ;;  %3112 = vmatprep.subr.bf16.mxu1 (!%p2951_p8), %v3531_v6  ;;  %v3535_v13 = vld [vmem:[#allocation12 + $0xc8] sm:$0xff] (!%p2951_p8)   ;;  %v3538_v16 = vld [vmem:[#allocation12 + $0x50] sm:$0xff] (!%p2951_p8)  }
 0x8e1   : > { %v3533_v9 = vld [vmem:[#allocation12 + $0x80] sm:$0xff] (!%p2951_p8)   ;;  %v3539_v17 = vld [vmem:[#allocation12 + $0xd0] sm:$0xff] (!%p2951_p8)  }
 0x8e2   : > { %v1834_v18 = vadd.f32 %v3086_v15, %v1794_v14  ;;  %v3536_v14 = vld [vmem:[#allocation12 + $0x8] sm:$0xff] (!%p2951_p8)  }
 0x8e3   : > { %v3537_v15 = vld [vmem:[#allocation12 + $0x88] sm:$0xff] (!%p2951_p8)  }
 0x8e4   : > { %v1839_v20 = vadd.f32 %v1834_v18, %v4477_v19  ;;  %v3540_v18 = vld [vmem:[#allocation12 + $0x10] sm:$0xff] (!%p2951_p8)  }
 0x8e6   : > { %1840 = vadd.xlane.f32.xlu0 %v1839_v20 }
 0x973   : > { %v1841_v21 = vpop.xlane.xlu0 %1840 }
 0x974   : > { %v1842_v22 = vmul.f32 0.0078125, %v1841_v21  ;;  %v3542_v21 = vld [vmem:[#allocation12 + $0x58] sm:$0xff] (!%p2951_p8)  }
 0x976   : > { %v1843_v4 = vsub.f32 %v1839_v20, %v1842_v22  ;;  %v3541_v20 = vld [vmem:[#allocation12 + $0x90] sm:$0xff] (!%p2951_p8)   ;;  %v3543_v22 = vld [vmem:[#allocation12 + $0xd8] sm:$0xff] (!%p2951_p8)  }
 0x978   : > { %v1844_v25 = vmul.f32 %v1843_v4, %v1843_v4 }
 0x97a   : > { %1845 = vadd.xlane.f32.xlu1 %v1844_v25  ;;  %v3545_v25 = vld [vmem:[#allocation12 + $0x98] sm:$0xff] (!%p2951_p8)  }
 0xa07   : > { %v1846_v26 = vpop.xlane.xlu1 %1845 }
 0xa08   : > { %v1847_v27 = vmul.f32 0.0078125, %v1846_v26  ;;  %v3546_v26 = vld [vmem:[#allocation12 + $0x60] sm:$0xff] (!%p2951_p8)  }
 0xa0a   : > { %v1848_v28 = vadd.f32 1e-05, %v1847_v27  ;;  %v3547_v27 = vld [vmem:[#allocation12 + $0xe0] sm:$0xff] (!%p2951_p8)  }
 0xa0c   : > { %3480 = vrsqrt.f32 %v1848_v28  ;;  %v3548_v28 = vld [vmem:[#allocation12 + $0x20] sm:$0xff] (!%p2951_p8)  }
 0xa16   : > { %v3481_v36 = vpop.eup %3480 }
 0xa17   : > { %v1850_v19 = vmul.f32 %v3481_v36, %v1843_v4  ;;  %1865 = sbr.rel (%p2951_p8) target bundleno = 3078 (0xc06), region = 92  ;;  %v3544_v4 = vld [vmem:[#allocation12 + $0x18] sm:$0xff] (!%p2951_p8)   ;;  %v3552_v36 = vld [vmem:[#allocation12 + $0x28] sm:$0xff] (!%p2951_p8)  }
 0xa19   : > { %v1855_v39 = vmul.f32 %v1854_v3, %v1850_v19  ;;  %v3551_v3 = vld [vmem:[#allocation12 + $0xe8] sm:$0xff] (!%p2951_p8)   ;;  %v3554_v19 = vld [vmem:[#allocation12 + $0x70] sm:$0xff] (!%p2951_p8)  }
 0xa1b   : > { %v4557_v40 = vadd.f32 %v1859_v38, %v1855_v39  ;;  %v3553_v38 = vld [vmem:[#allocation12 + $0xa8] sm:$0xff] (!%p2951_p8)   ;;  %v3555_v39 = vld [vmem:[#allocation12 + $0xf0] sm:$0xff] (!%p2951_p8)  }
 0xa1d   : > { %1861 = vst [vmem:[#allocation2] sm:$0xff] %v4557_v40  ;;  %v1870_v2 = vpack.c.bf16 (!%p2951_p8), %v4557_v40, %v4557_v40  ;;  %v3556_v40 = vld [vmem:[#allocation12 + $0x30] sm:$0xff] (!%p2951_p8)  }
 0xa1f   : > { %2112 = vmatmul.mubr.bf16.vlgmr.msra.gmra.mrb[0].mxu0 %v1870_v2  ;;  %2153 = vmatmul.mubr.bf16.vlgmr.msra.gmra.mrb[0].mxu1 %v1870_v2 }
 0xa20   : > { %3091 = vmatpush3.bf16.msra.mxu0 %v3532_v8  ;;  %3113 = vmatpush3.bf16.msra.mxu1 %v3533_v9 }
 0xa21   : > { %3092 = vmatprep.subr.bf16.mxu0 %v3534_v10  ;;  %3114 = vmatprep.subr.bf16.mxu1 %v3535_v13 }
 0xa24   : > { %3093 = vmatpush3.bf16.msra.mxu0 %v3536_v14  ;;  %3115 = vmatpush3.bf16.msra.mxu1 %v3537_v15 }
 0xa25   : > { %3094 = vmatprep.subr.bf16.mxu0 %v3538_v16  ;;  %3116 = vmatprep.subr.bf16.mxu1 %v3539_v17 }
 0xa28   : > { %3095 = vmatpush3.bf16.msra.mxu0 %v3540_v18  ;;  %3117 = vmatpush3.bf16.msra.mxu1 %v3541_v20 }
 0xa29   : > { %3096 = vmatprep.subr.bf16.mxu0 %v3542_v21  ;;  %3118 = vmatprep.subr.bf16.mxu1 %v3543_v22 }
 0xa2c   : > { %3097 = vmatpush3.bf16.msra.mxu0 %v3544_v4  ;;  %3119 = vmatpush3.bf16.msra.mxu1 %v3545_v25 }
 0xa2d   : > { %3098 = vmatprep.subr.bf16.mxu0 %v3546_v26  ;;  %3120 = vmatprep.subr.bf16.mxu1 %v3547_v27 }
 0xa30   : > { %3099 = vmatpush3.bf16.msra.mxu0 %v3548_v28  ;;  %3121 = vmatpush3.bf16.msra.mxu1 %v3549_v29 }
 0xa31   : > { %3100 = vmatprep.subr.bf16.mxu0 %v3550_v34  ;;  %3122 = vmatprep.subr.bf16.mxu1 %v3551_v3 }
 0xa34   : > { %3101 = vmatpush3.bf16.msra.mxu0 %v3552_v36  ;;  %3123 = vmatpush3.bf16.msra.mxu1 %v3553_v38 }
 0xa35   : > { %3102 = vmatprep.subr.bf16.mxu0 %v3554_v19  ;;  %3124 = vmatprep.subr.bf16.mxu1 %v3555_v39 }
 0xa38   : > { %3103 = vmatpush3.bf16.msra.mxu0 %v3556_v40  ;;  %3125 = vmatpush3.bf16.msra.mxu1 %v3557_v41 }
 0xa39   : > { %3104 = vmatprep.subr.bf16.mxu0 %v3558_v42  ;;  %3126 = vmatprep.subr.bf16.mxu1 %v3559_v24 }
 0xa3c   : > { %3105 = vmatpush3.bf16.msra.mxu0 %v3560_v44  ;;  %3127 = vmatpush3.bf16.msra.mxu1 %v3561_v35 }
 0xaf2   : > { %v2113_v43 = vpop.f32.mrb[0].mxu0  ;;  %v2154_v53 = vpop.f32.mrb[0].mxu1 }
 0xaf3   : > { %v4582_v54 = vadd.f32 %v2113_v43, %v1906_v48  ;;  %v4584_v50 = vadd.f32 %v2154_v53, %v1914_v49  ;;  %v2115_v55 = vpop.f32.mrb[1].mxu0  ;;  %v2156_v11 = vpop.f32.mrb[1].mxu1 }
 0xaf4   : > { %v4586_v56 = vadd.f32 %v2115_v55, %v1910_v51  ;;  %v4588_v32 = vadd.f32 %v2156_v11, %v1918_v52  ;;  %v2117_v57 = vpop.f32.mrb[2].mxu0  ;;  %v2158_v58 = vpop.f32.mrb[2].mxu1 }
 0xaf5   : > { %v4591_v59 = vmul.f32 0.70710677, %v4582_v54  ;;  %v4594_v60 = vmul.f32 0.70710677, %v4584_v50  ;;  %v2118_v8 = vpop.f32.mrb[3].mxu0  ;;  %v2159_v9 = vpop.f32.mrb[3].mxu1 }
 0xaf6   : > { %v4597_v31 = vmul.f32 0.70710677, %v4586_v56  ;;  %v4600_v61 = vmul.f32 0.70710677, %v4588_v32 }
 0xaf7   : > { %v2169_v45 = vand.u32 2147483647, %v4591_v59  ;;  %v2171_v62 = vand.u32 2147483647, %v4594_v60  ;;  %vm2249_vm8 = vcmp.ge.f32.partialorder %v4591_v59, 0.0  ;;  %vm2251_vm9 = vcmp.ge.f32.partialorder %v4594_v60, 0.0 }
 0xaf8   : > { %v2170_v1 = vand.u32 2147483647, %v4597_v31  ;;  %v2172_v63 = vand.u32 2147483647, %v4600_v61  ;;  %vm2250_vm10 = vcmp.ge.f32.partialorder %v4597_v31, 0.0  ;;  %vm2252_vm11 = vcmp.ge.f32.partialorder %v4600_v61, 0.0 }
 0xaf9   : > { %v2173_v0 = vmul.f32 0.3275911, %v2169_v45  ;;  %v2175_v7 = vmul.f32 0.3275911, %v2171_v62  ;;  %v2225_v14 = vsub.f32 0.0, %v2169_v45  ;;  %v2227_v15 = vsub.f32 0.0, %v2171_v62 }
 0xafa   : > { %v2174_v12 = vmul.f32 0.3275911, %v2170_v1  ;;  %v2176_v6 = vmul.f32 0.3275911, %v2172_v63  ;;  %v2226_v18 = vsub.f32 0.0, %v2170_v1  ;;  %v2228_v25 = vsub.f32 0.0, %v2172_v63 }
 0xafb   : > { %v2177_v2 = vadd.f32 1.0, %v2173_v0  ;;  %v2179_v5 = vadd.f32 1.0, %v2175_v7  ;;  %v2229_v17 = vmul.f32 %v2225_v14, %v2169_v45  ;;  %v2231_v22 = vmul.f32 %v2227_v15, %v2171_v62 }
 0xafc   : > { %v2178_v10 = vadd.f32 1.0, %v2174_v12  ;;  %v2180_v13 = vadd.f32 1.0, %v2176_v6  ;;  %v2230_v34 = vmul.f32 %v2226_v18, %v2170_v1  ;;  %v2232_v40 = vmul.f32 %v2228_v25, %v2172_v63 }
 0xafd   : > { %3562 = vrcp.f32 %v2177_v2  ;;  %v2233_v28 = vmul.f32 1.442695, %v2229_v17  ;;  %v2237_v36 = vmul.f32 1.442695, %v2231_v22  ;;  %v2163_v60 = vmul.f32 0.5, %v4584_v50 }
 0xafe   : > { %3564 = vrcp.f32 %v2179_v5  ;;  %v2235_v35 = vmul.f32 1.442695, %v2230_v34  ;;  %v2239_v49 = vmul.f32 1.442695, %v2232_v40  ;;  %v2340_v50 = vrot.slane %v4566_v46, %v983_v23 }
 0xaff   : > { %3566 = vrcp.f32 %v2178_v10 }
 0xb00   : > { %3568 = vrcp.f32 %v2180_v13 }
 0xb01   : > { %3570 = vpow2.f32 %v2233_v28 }
 0xb02   : > { %3572 = vpow2.f32 %v2237_v36 }
 0xb03   : > { %3574 = vpow2.f32 %v2235_v35 }
 0xb04   : > { %3576 = vpow2.f32 %v2239_v49 }
 0xb07   : > { %v3563_v16 = vpop.eup %3562 }
 0xb08   : > { %v3565_v20 = vpop.eup %3564  ;;  %v2189_v21 = vmul.f32 1.0614054, %v3563_v16 }
 0xb09   : > { %v2191_v4 = vmul.f32 1.0614054, %v3565_v20  ;;  %v3567_v27 = vpop.eup %3566 }
 0xb0a   : > { %v2193_v26 = vadd.f32 -1.4531521, %v2189_v21  ;;  %v2190_v38 = vmul.f32 1.0614054, %v3567_v27  ;;  %v3569_v19 = vpop.eup %3568 }
 0xb0b   : > { %v2195_v29 = vadd.f32 -1.4531521, %v2191_v4  ;;  %v2192_v24 = vmul.f32 1.0614054, %v3569_v19  ;;  %v3571_v2 = vpop.eup %3570 }
 0xb0c   : > { %v2197_v3 = vmul.f32 %v3563_v16, %v2193_v26  ;;  %v2194_v42 = vadd.f32 -1.4531521, %v2190_v38  ;;  %v3573_v6 = vpop.eup %3572 }
 0xb0d   : > { %v2199_v39 = vmul.f32 %v3565_v20, %v2195_v29  ;;  %v2196_v47 = vadd.f32 -1.4531521, %v2192_v24  ;;  %v3575_v18 = vpop.eup %3574 }
 0xb0e   : > { %v2201_v41 = vadd.f32 1.4214138, %v2197_v3  ;;  %v2198_v37 = vmul.f32 %v3567_v27, %v2194_v42  ;;  %v3577_v26 = vpop.eup %3576 }
 0xb0f   : > { %v2203_v44 = vadd.f32 1.4214138, %v2199_v39  ;;  %v2200_v43 = vmul.f32 %v3569_v19, %v2196_v47 }
 0xb10   : > { %v2205_v33 = vmul.f32 %v3563_v16, %v2201_v41  ;;  %v2202_v52 = vadd.f32 1.4214138, %v2198_v37  ;;  %v2162_v41 = vmul.f32 0.5, %v4586_v56 }
 0xb11   : > { %v2207_v48 = vmul.f32 %v3565_v20, %v2203_v44  ;;  %v2204_v57 = vadd.f32 1.4214138, %v2200_v43  ;;  %v2164_v44 = vmul.f32 0.5, %v4588_v32 }
 0xb12   : > { %v2209_v51 = vadd.f32 -0.28449672, %v2205_v33  ;;  %v2206_v11 = vmul.f32 %v3567_v27, %v2202_v52 }
 0xb13   : > { %v2211_v53 = vadd.f32 -0.28449672, %v2207_v48  ;;  %v2208_v1 = vmul.f32 %v3569_v19, %v2204_v57 }
 0xb14   : > { %v2213_v55 = vmul.f32 %v3563_v16, %v2209_v51  ;;  %v2210_v62 = vadd.f32 -0.28449672, %v2206_v11 }
 0xb15   : > { %v2215_v58 = vmul.f32 %v3565_v20, %v2211_v53  ;;  %v2212_v12 = vadd.f32 -0.28449672, %v2208_v1 }
 0xb16   : > { %v2217_v45 = vadd.f32 0.2548296, %v2213_v55  ;;  %v2214_v7 = vmul.f32 %v3567_v27, %v2210_v62 }
 0xb17   : > { %v2219_v63 = vadd.f32 0.2548296, %v2215_v58  ;;  %v2216_v10 = vmul.f32 %v3569_v19, %v2212_v12 }
 0xb18   : > { %v2221_v0 = vmul.f32 %v3563_v16, %v2217_v45  ;;  %v2218_v9 = vadd.f32 0.2548296, %v2214_v7 }
 0xb19   : > { %v2223_v5 = vmul.f32 %v3565_v20, %v2219_v63  ;;  %v2220_v17 = vadd.f32 0.2548296, %v2216_v10 }
 0xb1a   : > { %v2241_v8 = vmul.f32 %v3571_v2, %v2221_v0  ;;  %v2222_v15 = vmul.f32 %v3567_v27, %v2218_v9  ;;  %v2161_v27 = vmul.f32 0.5, %v4582_v54 }
 0xb1b   : > { %v2243_v13 = vmul.f32 %v3573_v6, %v2223_v5  ;;  %v2224_v25 = vmul.f32 %v3569_v19, %v2220_v17 }
 0xb1c   : > { %v2245_v14 = vsub.f32 1.0, %v2241_v8  ;;  %v2242_v4 = vmul.f32 %v3575_v18, %v2222_v15 }
 0xb1d   : > { %v2247_v21 = vsub.f32 1.0, %v2243_v13  ;;  %v2244_v29 = vmul.f32 %v3577_v26, %v2224_v25 }
 0xb1e   : > { %v2253_v22 = vsub.f32 0.0, %v2245_v14  ;;  %v2246_v20 = vsub.f32 1.0, %v2242_v4 }
 0xb1f   : > { %v2255_v16 = vsub.f32 0.0, %v2247_v21  ;;  %v2248_v38 = vsub.f32 1.0, %v2244_v29 }
 0xb20   : > { %v2257_v28 = vsel %vm2249_vm8, %v2245_v14, %v2253_v22  ;;  %v2254_v36 = vsub.f32 0.0, %v2246_v20 }
 0xb21   : > { %v2259_v34 = vsel %vm2251_vm9, %v2247_v21, %v2255_v16  ;;  %v2261_v3 = vadd.f32 1.0, %v2257_v28  ;;  %v2256_v19 = vsub.f32 0.0, %v2248_v38 }
 0xb22   : > { %v2263_v39 = vadd.f32 1.0, %v2259_v34  ;;  %v2258_v40 = vsel %vm2250_vm10, %v2246_v20, %v2254_v36 }
 0xb23   : > { %v2262_v59 = vadd.f32 1.0, %v2258_v40  ;;  %v2265_v42 = vmul.f32 %v2261_v3, %v2161_v27  ;;  %v2260_v24 = vsel %vm2252_vm11, %v2248_v38, %v2256_v19 }
 0xb24   : > { %v2264_v33 = vadd.f32 1.0, %v2260_v24  ;;  %v2267_v37 = vmul.f32 %v2263_v39, %v2163_v60 }
 0xb25   : > { %v2266_v35 = vmul.f32 %v2262_v59, %v2162_v41  ;;  %v2269_v54 = vpack.c.bf16 %v2265_v42, %v2265_v42 }
 0xb26   : > { %v2268_v47 = vmul.f32 %v2264_v33, %v2164_v44  ;;  %v2271_v49 = vpack.c.bf16 %v2267_v37, %v2267_v37 }
 0xb27   : > { %v2270_v31 = vpack.c.bf16 %v2266_v35, %v2266_v35 }
 0xb28   : > { %v2272_v48 = vpack.c.bf16 %v2268_v47, %v2268_v47 }
 0xb29   : > { %2565 = vmatprep.mubr.bf16.mxu0 %v2270_v31 }
 0xb2a   : > { %2566 = vmatmul.mubr.bf16.vlgmr.msra.gmra.mrb[4].mxu0 %v2269_v54  ;;  %2605 = vmatprep.mubr.bf16.mxu1 %v2272_v48 }
 0xb2b   : > { %2606 = vmatmul.mubr.bf16.vlgmr.msra.gmra.mrb[4].mxu1 %v2271_v49 }
 0xbfd   : > { %v3106_v56 = vpop.f32.mrb[4].mxu0 }
 0xbfe   : > { %v3107_v61 = vpop.f32.mrb[5].mxu0  ;;  %v3128_v32 = vpop.f32.mrb[4].mxu1 }
 0xbff   : > { %v3108_v51 = vadd.f32 %v3107_v61, %v3106_v56  ;;  %v3109_v52 = vpop.f32.mrb[6].mxu0  ;;  %v3129_v43 = vpop.f32.mrb[5].mxu1 }
 0xc00   : > { %v3110_v53 = vpop.f32.mrb[7].mxu0  ;;  %v3130_v11 = vadd.f32 %v3129_v43, %v3128_v32  ;;  %v3131_v57 = vpop.f32.mrb[6].mxu1 }
 0xc01   : > { %v2568_v55 = vadd.f32 %v3108_v51, %v2340_v50  ;;  %v3132_v58 = vpop.f32.mrb[7].mxu1 }
 0xc03   : > { %v2608_v45 = vadd.f32 %v3130_v11, %v2568_v55 }
 0xc05   : > { %2613 = vst [vmem:[%s572_s2] sm:$0xff] %v2608_v45 }
 0xc06 PF: > { %s4774_s9 = sld [smem:[#allocation24_spill]]  ;;  %s4775_s26 = sld [smem:[#allocation26_spill]] }
 0xc07   : > { %s4776_s12 = sld [smem:[#allocation39_spill]]  ;;  %s2628_s11 = sshll.u32 %s572_s2, 4  ;;  %s2629_s11 = int_to_ptr.vmem [resolvable:$true] %s2628_s11 }
 0xc08   : > { %s4777_s19 = sand.u32 1, %s3856_s14   ;;  %s3754_s28 = scalar_lea.vmem %s2629_s11, 128 }
 0xc09   : > { %s2615_s20 = scalar_lea.sflag [#allocation5], %s4777_s19  ;;  %p3755_p12 = scmp.ne.s32.totalorder %s2629_s11, %s3754_s28 }
 0xc0a   : > { %s3911_s10 = smov [#allocation14]  }
 0xc0b   : > { %s3758_s7 = sshll.u32 %s3911_s10, 4  ;;  %s3759_s7 = int_to_ptr.vmem [resolvable:$false] %s3758_s7 }
 0xc0c   : > { %s3017_s27 = sshll.u32 %s4774_s9, 7  ;;  %p4778_p11 = scmp.ne.s32.totalorder %s4775_s26, 0 }
 0xc0d   : > { %s4623_s3 = scalar_lea.hbm %s4776_s12, %s3017_s27  ;;  %s3760_s4 = scalar_lea.vmem %s3759_s7, 256 }
 0xc0e   : > { %p3756_p2 = pnand %p3755_p12, %p4778_p11  ;;  %p3761_p1 = scmp.lt.s32.totalorder %s2629_s11, %s3759_s7 }
 0xc0f   : > { %p3762_p9 = scmp.lt.s32.totalorder %s3760_s4, %s3754_s28 }
 0xc10   : > { %p3757_p3 = pneg %p3756_p2 }
 0xc11   : > { %p3763_p13 = por %p3762_p9, %p3761_p1 }
 0xc13   : > { %p3764_p0 = pnand %p3763_p13, %p3757_p3 }
 0xc15   : > { %3767 = shalt.err (!%p3764_p0)
}
 0xc16   : > { %s3768_s2 = scalar_lea.hbm %s4623_s3, 128  ;;  %s3772_s24 = scalar_lea.hbm %s4776_s12, 256 }
 0xc17   : > { %p3769_p7 = scmp.ne.s32.totalorder %s4623_s3, %s3768_s2  ;;  %p3773_p10 = scmp.lt.u32.totalorder %s4623_s3, %s4776_s12 }
 0xc18   : > { %p3774_p5 = scmp.lt.u32.totalorder %s3772_s24, %s3768_s2  ;;  %p3776_p12 = scmp.lt.u32.totalorder %s3768_s2, %s4623_s3 }
 0xc19   : > { %p3770_p4 = pnand %p3769_p7, %p4778_p11 }
 0xc1a   : > { %p3775_p8 = por %p3774_p5, %p3773_p10 }
 0xc1b   : > { %p3771_p6 = pneg %p3770_p4 }
 0xc1c   : > { %p3777_p2 = por %p3776_p12, %p3775_p8 }
 0xc1e   : > { %p3778_p3 = pnand %p3777_p2, %p3771_p6 }
 0xc20   : > { %3781 = shalt.err (!%p3778_p3)
}
 0xc21   : > { %3205 = dma.vmem_to_hbm [thread:$0]  (%p4778_p11), %s2629_s11, 128, %s4623_s3, %s2615_s20  }
 0xc22 PF: > { %s4779_s1 = sld [smem:[#allocation21_spill]]  ;;  %s4780_s30 = sld [smem:[#allocation27_spill]] }
 0xc23   : > { %p3236_p1 = scmp.ge.s32.totalorder %s3892_s23, 2 }
 0xc28   : > { %s2640_s9 = sand.u32 1, %s4779_s1   ;;  %p4781_p9 = scmp.ne.s32.totalorder %s4780_s30, 0 }
 0xc29   : > { %s2641_s27 = scalar_lea.sflag [#allocation5], %s2640_s9 }
 0xc2a   : > { %p3228_p13 = pnand %p3236_p1, %p4781_p9 }
 0xc2c   : > { %3847 = dma.done.wait (!%p3228_p13), %s2641_s27, 128  }
 0xc2d   : > { %3849 = vsyncadd (!%p3228_p13), %s2641_s27, 4294967168  ;;  %s33_s23 = sadd.s32 1, %s3892_s23   ;;  %s4782_s25 = sld [smem:[#allocation31_spill]] }
 0xc2e   : > { %p30_p0 = scmp.ge.s32.totalorder %s33_s23, 6   ;;  %s4783_s26 = sld [smem:[#allocation22_spill]] }
 0xc2f   : > { %s4784_s18 = sld [smem:[#allocation30_spill]]  ;;  %s4785_s20 = sld [smem:[#allocation25_spill]] }
 0xc30   : > { %s4786_s3 = sld [smem:[#allocation28_spill]]  ;;  %s4787_s22 = sld [smem:[#allocation29_spill]] }
 0xc31   : > { %s4788_s13 = smov %s3856_s14  ;;  %s4789_s14 = smov %s3860_s15 }
 0xc32   : > { %s4791_s16 = smov %s3868_s17  ;;  %s4793_s19 = smov %s3884_s21 }
 0xc33   : > { %s4790_s15 = smov %s4782_s25  ;;  %32 = sbr.rel (!%p30_p0) target bundleno = 23 (0x17), region = 167 }
 0xc34   : > { %s4792_s17 = smov %s4783_s26 }
 0xc36   : > { %s4794_s21 = smov %s4786_s3 }
 0xc3a   :  { %2646 = vsyncpa [#allocation4], 1 }
 0xc3b   :  { %2648 = vsyncpa [#allocation4 + $0x1], 1 }
 0xc3c   :  { %2649 = vsyncpa [#allocation7], 1 }
 0xc3d   :  { %2651 = vsyncpa [#allocation7 + $0x1], 1 }
 0xc3e   :  { %2652 = vsyncpa [#allocation10], 1 }
 0xc3f   :  { %2654 = vsyncpa [#allocation10 + $0x1], 1 }
 0xc40   :  { %2655 = vsyncpa [#allocation13], 1 }
 0xc41   :  { %2656 = vsyncpa [#allocation5], 1 }
 0xc42   :  { %2658 = vsyncpa [#allocation5 + $0x1], 1 }

</bundles_post_ra>
